<compile_context>
chip_gen: v7x
topology: tpu7x:2x2x1
jax: 0.10.0
libtpu: 0.0.40
codegen_flags: <defaults>
</compile_context>

<pallas_src>
import functools
import math

import jax
import jax.numpy as jnp
from jax import lax
from jax.experimental import pallas as pl
from jax.experimental.pallas import tpu as pltpu

# ---------------- synthetic AST config (small) ----------------
PATCH = 16          # AST patch_size
F_STRIDE = 10       # AST frequency_stride
T_STRIDE = 10       # AST time_stride
HIDDEN = 32
NUM_LAYERS = 2
NUM_HEADS = 4
INTERMEDIATE = 128
NUM_CLASSES = 10
LN_EPS = 1e-12      # AST layer_norm_eps
LANE = 128


# ---------------- in-kernel helpers ----------------
def _ln(x, w, b):
    mu = jnp.mean(x, axis=-1, keepdims=True)
    var = jnp.mean((x - mu) ** 2, axis=-1, keepdims=True)
    return (x - mu) * lax.rsqrt(var + LN_EPS) * w + b


def _gelu(x):
    # tanh-approx GELU (EUP tanh instead of a VALU erf polynomial); small
    # numeric deviation from HF exact "gelu".
    return jax.nn.gelu(x, approximate=True)


# ---------------- single fused Pallas kernel (one batch element / grid step) ----
def _fused_ast_kernel(H,
                      patches_ref,   # (1, S, P2)      bf16, per-batch block
                      emb_add_ref,   # (S, D)          f32
                      patch_w_ref,   # (P2, D)         bf16
                      w_attn_ref,    # (L, 4, H, D, hd) bf16  [wq, wk, wv, wo^T] per head
                      b_qkv_ref,     # (L, 3, H, 1, hd) f32   [bq, bk, bv] per head
                      w1_ref,        # (L, D, I)       bf16
                      w2_ref,        # (L, I, D)       bf16
                      lnb_ref,       # (L, 7, 128)     f32  [ln1w,ln1b,ln2w,ln2b,bo,b1,b2]
                      head_ref,      # (D+5, 128)      f32  [head_w | head_b | fLNw,fLNb,mLNw,mLNb]
                      logits_ref,    # (1, 1, 128)     f32
                      cls_ref):      # (1, 1, D)       f32
    S = patches_ref.shape[1]
    D = patch_w_ref.shape[1]
    L = w_attn_ref.shape[0]
    I = w1_ref.shape[2]
    hd = D // H
    scale = 1.0 / math.sqrt(hd)

    # Patch embedding. CLS/DIST rows of `patches` are zero-padded; their token
    # embeddings, all positional embeddings and the conv bias are folded into
    # the single additive term `emb_add` (patch_b is deliberately excluded from
    # the two CLS/DIST rows of emb_add).
    h = (jnp.dot(patches_ref[0], patch_w_ref[...],
                 preferred_element_type=jnp.float32)
         + emb_add_ref[...])                                      # (S, D) f32

    def layer(l, h):
        lnb = lnb_ref[l]                                          # (7, 128)
        wl = w_attn_ref[l]                                        # (4, H, D, hd)
        bqkv = b_qkv_ref[l]                                       # (3, H, 1, hd)

        # --- pre-LN self attention (batched over heads, no lane slicing) ---
        x = _ln(h, lnb[0:1, :D], lnb[1:2, :D])                    # (S, D) f32
        xh = jnp.broadcast_to(x.astype(jnp.bfloat16)[None], (H, S, D))

        q = jnp.einsum('hsd,hde->hse', xh, wl[0],
                       preferred_element_type=jnp.float32) + bqkv[0]
        k = jnp.einsum('hsd,hde->hse', xh, wl[1],
                       preferred_element_type=jnp.float32) + bqkv[1]
        v = jnp.einsum('hsd,hde->hse', xh, wl[2],
                       preferred_element_type=jnp.float32) + bqkv[2]

        s = jnp.einsum('hqe,hke->hqk', q, k,
                       preferred_element_type=jnp.float32) * scale
        s = s - jnp.max(s, axis=-1, keepdims=True)
        p = jnp.exp(s)
        p = p * pl.reciprocal(jnp.sum(p, axis=-1, keepdims=True), approx=True)
        ctx = jnp.einsum('hqk,hke->hqe', p, v,
                         preferred_element_type=jnp.float32)      # (H, S, hd)

        # output projection: per-head matmul, sum over heads (no lane concat)
        attn = (jnp.einsum('hqe,hde->hqd', ctx.astype(jnp.bfloat16), wl[3],
                           preferred_element_type=jnp.float32).sum(axis=0)
                + lnb[4:5, :D])                                   # (S, D)
        h1 = h + attn                                             # residual 1

        # --- pre-LN GELU MLP ---
        y = _ln(h1, lnb[2:3, :D], lnb[3:4, :D])
        inter = _gelu(jnp.dot(y.astype(jnp.bfloat16), w1_ref[l],
                              preferred_element_type=jnp.float32)
                      + lnb[5:6, :I])
        mlp = (jnp.dot(inter.astype(jnp.bfloat16), w2_ref[l],
                       preferred_element_type=jnp.float32)
               + lnb[6:7, :D])
        return h1 + mlp                                           # residual 2

    h = lax.fori_loop(0, L, layer, h, unroll=True)                # (S, D)

    # ---- head (ASTModel final LN + (CLS+DIST)/2 pooling + ASTMLPHead) ----
    head = head_ref[...]                                          # (D+5, 128)
    seq = _ln(h, head[D + 1:D + 2, :D], head[D + 2:D + 3, :D])    # final LN
    pooled = (seq[0:1, :] + seq[1:2, :]) * 0.5                    # (1, D)
    hp = _ln(pooled, head[D + 3:D + 4, :D], head[D + 4:D + 5, :D])  # head LN
    logits = (jnp.dot(hp, head[:D, :], preferred_element_type=jnp.float32)
              + head[D:D + 1, :])                                 # (1, 128) lane-dense
    logits_ref[...] = logits.reshape(logits_ref.shape)
    # cls_state = hidden_states[-1][:, 0, :]  (pre final-LN)
    cls_ref[...] = h[0:1, :].reshape(cls_ref.shape)


# ---------------- glue ----------------
def _extract_patches(spec, patch, fs, ts):
    # spec: (B, F, T) -> (B, fo*to, patch*patch); patch order (freq_out, time_out),
    # (kh, kw) row-major inside a patch (matches torch Conv2d weight flattening).
    B, F, T = spec.shape
    fo = (F - patch) // fs + 1
    to = (T - patch) // ts + 1
    fi = (jnp.arange(fo) * fs)[:, None] + jnp.arange(patch)[None, :]   # (fo, patch)
    ti = (jnp.arange(to) * ts)[:, None] + jnp.arange(patch)[None, :]   # (to, patch)
    p = spec[:, fi[:, None, :, None], ti[None, :, None, :]]            # (B,fo,to,p,p)
    return p.reshape(B, fo * to, patch * patch)


def init_params(key, *, hidden, num_layers, intermediate,
                patch_dim, num_patches, num_classes):
    def nrm(k, shape):
        return jax.random.normal(k, shape, jnp.float32) * 0.02

    ks = jax.random.split(key, 20)
    D, L, I = hidden, num_layers, intermediate
    ones, zeros = jnp.ones, jnp.zeros
    return {
        "patch_w": nrm(ks[0], (patch_dim, D)),          # conv weight, (kh*kw, D)
        "patch_b": nrm(ks[1], (1, D)),
        "cls_token": nrm(ks[2], (1, 1, D)),
        "dist_token": nrm(ks[3], (1, 1, D)),
        "pos_emb": nrm(ks[4], (1, num_patches + 2, D)),
        "final_ln_w": ones((D,), jnp.float32),
        "final_ln_b": zeros((D,), jnp.float32),
        "mlp_ln_w": ones((D,), jnp.float32),
        "mlp_ln_b": zeros((D,), jnp.float32),
        "head_w": nrm(ks[5], (D, num_classes)),
        "head_b": nrm(ks[6], (1, num_classes)),
        "layers": {
            "ln1_w": ones((L, D), jnp.float32), "ln1_b": zeros((L, D), jnp.float32),
            "ln2_w": ones((L, D), jnp.float32), "ln2_b": zeros((L, D), jnp.float32),
            "wq": nrm(ks[7], (L, D, D)), "bq": nrm(ks[8], (L, D)),
            "wk": nrm(ks[9], (L, D, D)), "bk": nrm(ks[10], (L, D)),
            "wv": nrm(ks[11], (L, D, D)), "bv": nrm(ks[12], (L, D)),
            "wo": nrm(ks[13], (L, D, D)), "bo": nrm(ks[14], (L, D)),
            "w1": nrm(ks[15], (L, D, I)), "b1": nrm(ks[16], (L, I)),
            "w2": nrm(ks[17], (L, I, D)), "b2": nrm(ks[18], (L, D)),
        },
    }


def pack_params(params, num_heads=NUM_HEADS):
    """Pack natural AST params into a few lane-aligned, mostly bf16 slabs."""
    lyr = params["layers"]
    D = params["patch_w"].shape[1]
    L = lyr["wq"].shape[0]
    I = lyr["w1"].shape[2]
    C = params["head_w"].shape[1]
    H, hd = num_heads, D // num_heads
    assert D <= LANE and I <= LANE and C <= LANE

    def pad_lane(a):
        return jnp.pad(a, [(0, 0)] * (a.ndim - 1) + [(0, LANE - a.shape[-1])])

    # per-head weight slab: wq/wk/wv split over output heads, wo^T split over
    # input heads -> all four are (L, H, D, hd) -> stack to (L, 4, H, D, hd).
    def split_out(w):   # (L, D_in, D_out) -> (L, H, D_in, hd)
        return w.reshape(L, D, H, hd).transpose(0, 2, 1, 3)

    wo_t = lyr["wo"].reshape(L, H, hd, D).transpose(0, 1, 3, 2)     # (L, H, D, hd)
    w_attn = jnp.stack([split_out(lyr["wq"]), split_out(lyr["wk"]),
                        split_out(lyr["wv"]), wo_t], axis=1)

    # qkv biases per head: (L, 3, H, 1, hd)
    b_qkv = jnp.stack([lyr["bq"].reshape(L, H, 1, hd),
                       lyr["bk"].reshape(L, H, 1, hd),
                       lyr["bv"].reshape(L, H, 1, hd)], axis=1)

    # all per-layer LN params + remaining biases, lane-padded: (L, 7, 128)
    lnb = jnp.stack([pad_lane(lyr[n]) for n in
                     ("ln1_w", "ln1_b", "ln2_w", "ln2_b", "bo", "b1", "b2")],
                    axis=1)

    # head slab: rows [0:D]=head_w (lane padded), [D]=head_b,
    # [D+1:D+3]=final LN w/b, [D+3:D+5]=MLP-head LN w/b.
    head = jnp.concatenate([
        pad_lane(params["head_w"]),
        pad_lane(params["head_b"]),
        pad_lane(params["final_ln_w"][None]),
        pad_lane(params["final_ln_b"][None]),
        pad_lane(params["mlp_ln_w"][None]),
        pad_lane(params["mlp_ln_b"][None]),
    ], axis=0)

    # CLS/DIST tokens + positional embeddings + conv bias folded into one (S, D)
    # additive term; correct because the CLS/DIST patch rows are zero-padded and
    # patch_b is excluded from those two rows.
    pos = params["pos_emb"][0]
    emb_add = jnp.concatenate([
        params["cls_token"][0] + pos[0:1],
        params["dist_token"][0] + pos[1:2],
        pos[2:] + params["patch_b"],
    ], axis=0)

    return {
        "patch_w": params["patch_w"].astype(jnp.bfloat16),
        "emb_add": emb_add.astype(jnp.float32),
        "w_attn": w_attn.astype(jnp.bfloat16),
        "b_qkv": b_qkv.astype(jnp.float32),
        "w1": lyr["w1"].astype(jnp.bfloat16),
        "w2": lyr["w2"].astype(jnp.bfloat16),
        "lnb": lnb.astype(jnp.float32),
        "head": head.astype(jnp.float32),
    }


def ast_forward(packed, input_values, num_heads=NUM_HEADS,
                attention_mask=None, labels=None, return_hidden_state=False):
    # TODO(synk): HF checkpoint loading / dataset-based num_classes inference has
    # no kernel equivalent; parameters are synthetic. attention_mask is a no-op
    # (forwarded as head_mask=None in the reference) and labels are unused.
    del attention_mask, labels
    B = input_values.shape[0]
    x = jnp.squeeze(input_values, axis=1)            # (B, F, T)   torch .squeeze(1)
    x = jnp.swapaxes(x, 1, 2)                        # (B, T, F)   torch .transpose(1,2)
    spec = jnp.swapaxes(x, 1, 2)                     # (B, F, T)   AST unsqueeze+transpose

    patches = _extract_patches(spec, PATCH, F_STRIDE, T_STRIDE)   # (B, P, 256)
    P, P2 = patches.shape[1], patches.shape[2]
    S = P + 2
    D = packed["patch_w"].shape[1]
    assert packed["emb_add"].shape[0] == S

    # Zero-pad two leading CLS/DIST rows per batch; bf16 matmul operand
    # (the LN/softmax/GELU math stays f32 in-kernel).
    patches_aug = jnp.concatenate(
        [jnp.zeros((B, 2, P2), patches.dtype), patches], axis=1
    ).astype(jnp.bfloat16)                           # (B, S, P2)

    kernel = functools.partial(_fused_ast_kernel, num_heads)
    vmem = pl.BlockSpec(memory_space=pltpu.MemorySpace.VMEM)  # whole array, resident
    logits_pad, cls3 = pl.pallas_call(
        kernel,
        out_shape=(jax.ShapeDtypeStruct((B, 1, LANE), jnp.float32),
                   jax.ShapeDtypeStruct((B, 1, D), jnp.float32)),
        grid=(B,),
        in_specs=[pl.BlockSpec((1, S, P2), lambda b: (b, 0, 0))] + [vmem] * 8,
        out_specs=(pl.BlockSpec((1, 1, LANE), lambda b: (b, 0, 0)),
                   pl.BlockSpec((1, 1, D), lambda b: (b, 0, 0))),
        compiler_params=pltpu.CompilerParams(
            dimension_semantics=("parallel",)),      # one batch element per TC on v7x
    )(patches_aug, packed["emb_add"], packed["patch_w"],
      packed["w_attn"], packed["b_qkv"], packed["w1"], packed["w2"],
      packed["lnb"], packed["head"])

    logits = logits_pad[:, 0, :NUM_CLASSES]
    if return_hidden_state:
        return logits, cls3[:, 0, :]
    return logits


if __name__ == "__main__":
    # input_values: (B, 1, num_mel_bins, max_length) = (2, 1, 26, 36)
    # -> 2 freq patches x 3 time patches = 6 patches, seq_len = 8 (incl. CLS/DIST)
    B, F, T = 2, 26, 36
    x = jax.random.normal(jax.random.PRNGKey(0), (B, 1, F, T), dtype=jnp.float32)

    fo = (F - PATCH) // F_STRIDE + 1
    to = (T - PATCH) // T_STRIDE + 1
    num_patches = fo * to

    params = init_params(
        jax.random.PRNGKey(1),
        hidden=HIDDEN, num_layers=NUM_LAYERS, intermediate=INTERMEDIATE,
        patch_dim=PATCH * PATCH, num_patches=num_patches,
        num_classes=NUM_CLASSES,
    )
    packed = pack_params(params, num_heads=NUM_HEADS)

    forward = jax.jit(lambda p, v: ast_forward(p, v, return_hidden_state=True))
    logits, cls_state = forward(packed, x)
    logits, cls_state = jax.block_until_ready((logits, cls_state))

    assert logits.shape == (B, NUM_CLASSES), logits.shape
    assert cls_state.shape == (B, HIDDEN), cls_state.shape
    assert bool(jnp.all(jnp.isfinite(logits)))
    assert bool(jnp.all(jnp.isfinite(cls_state)))
    print("KERNEL_OK")
</pallas_src>

<mosaic_0001>
module attributes {stable_mosaic.version = 11 : i64} {
  func.func @_fused_ast_kernel(%arg0: i32, %arg1: memref<1x8x256xbf16, #tpu.memory_space<vmem>>, %arg2: memref<8x32xf32, #tpu.memory_space<vmem>>, %arg3: memref<256x32xbf16, #tpu.memory_space<vmem>>, %arg4: memref<2x4x4x32x8xbf16, #tpu.memory_space<vmem>>, %arg5: memref<2x3x4x1x8xf32, #tpu.memory_space<vmem>>, %arg6: memref<2x32x128xbf16, #tpu.memory_space<vmem>>, %arg7: memref<2x128x32xbf16, #tpu.memory_space<vmem>>, %arg8: memref<2x7x128xf32, #tpu.memory_space<vmem>>, %arg9: memref<37x128xf32, #tpu.memory_space<vmem>>, %arg10: memref<1x1x128xf32, #tpu.memory_space<vmem>>, %arg11: memref<1x1x32xf32, #tpu.memory_space<vmem>>) attributes {dimension_semantics = [#tpu.dimension_semantics<parallel>], iteration_bounds = array<i64: 2>, scalar_prefetch = 0 : i64, scratch_operands = 0 : i64, tpu.core_type = #tpu.core_type<tc>, window_params = [{transform_indices = @transform_0, window_bounds = array<i64: 1, 8, 256>}, {pipeline_mode = #tpu.pipeline_mode<synchronous>, transform_indices = @transform_1, window_bounds = array<i64: 8, 32>}, {pipeline_mode = #tpu.pipeline_mode<synchronous>, transform_indices = @transform_2, window_bounds = array<i64: 256, 32>}, {pipeline_mode = #tpu.pipeline_mode<synchronous>, transform_indices = @transform_3, window_bounds = array<i64: 2, 4, 4, 32, 8>}, {pipeline_mode = #tpu.pipeline_mode<synchronous>, transform_indices = @transform_4, window_bounds = array<i64: 2, 3, 4, 1, 8>}, {pipeline_mode = #tpu.pipeline_mode<synchronous>, transform_indices = @transform_5, window_bounds = array<i64: 2, 32, 128>}, {pipeline_mode = #tpu.pipeline_mode<synchronous>, transform_indices = @transform_6, window_bounds = array<i64: 2, 128, 32>}, {pipeline_mode = #tpu.pipeline_mode<synchronous>, transform_indices = @transform_7, window_bounds = array<i64: 2, 7, 128>}, {pipeline_mode = #tpu.pipeline_mode<synchronous>, transform_indices = @transform_8, window_bounds = array<i64: 37, 128>}, {transform_indices = @transform_9, window_bounds = array<i64: 1, 1, 128>}, {transform_indices = @transform_10, window_bounds = array<i64: 1, 1, 32>}]} {
    %c0 = arith.constant 0 : index
    %c0_0 = arith.constant 0 : index
    %c0_1 = arith.constant 0 : index
    %0 = vector.load %arg1[%c0, %c0_0, %c0_1] : memref<1x8x256xbf16, #tpu.memory_space<vmem>>, vector<1x8x256xbf16>
    %1 = vector.shape_cast %0 : vector<1x8x256xbf16> to vector<8x256xbf16>
    %c0_2 = arith.constant 0 : index
    %c0_3 = arith.constant 0 : index
    %2 = vector.load %arg3[%c0_2, %c0_3] : memref<256x32xbf16, #tpu.memory_space<vmem>>, vector<256x32xbf16>
    %cst = arith.constant dense<0.000000e+00> : vector<8x32xf32>
    %3 = tpu.matmul %1, %2, %cst {dimension_numbers = #tpu.dot_dimension_numbers<[1], [0], [0], [1], [0, 0, 1, 1], [], []>} : vector<8x256xbf16>, vector<256x32xbf16>, vector<8x32xf32> -> vector<8x32xf32>
    %c0_4 = arith.constant 0 : index
    %c0_5 = arith.constant 0 : index
    %4 = vector.load %arg2[%c0_4, %c0_5] : memref<8x32xf32, #tpu.memory_space<vmem>>, vector<8x32xf32>
    %5 = arith.addf %3, %4 : vector<8x32xf32>
    %c0_i32 = arith.constant 0 : i32
    %6 = arith.index_cast %c0_i32 : i32 to index
    %c0_6 = arith.constant 0 : index
    %c0_7 = arith.constant 0 : index
    %7 = vector.load %arg8[%6, %c0_6, %c0_7] : memref<2x7x128xf32, #tpu.memory_space<vmem>>, vector<1x7x128xf32>
    %8 = vector.shape_cast %7 : vector<1x7x128xf32> to vector<7x128xf32>
    %9 = arith.index_cast %c0_i32 : i32 to index
    %c0_8 = arith.constant 0 : index
    %c0_9 = arith.constant 0 : index
    %c0_10 = arith.constant 0 : index
    %c0_11 = arith.constant 0 : index
    %10 = vector.load %arg4[%9, %c0_8, %c0_9, %c0_10, %c0_11] : memref<2x4x4x32x8xbf16, #tpu.memory_space<vmem>>, vector<1x4x4x32x8xbf16>
    %11 = vector.shape_cast %10 : vector<1x4x4x32x8xbf16> to vector<4x4x32x8xbf16>
    %12 = arith.index_cast %c0_i32 : i32 to index
    %c0_12 = arith.constant 0 : index
    %c0_13 = arith.constant 0 : index
    %c0_14 = arith.constant 0 : index
    %c0_15 = arith.constant 0 : index
    %13 = vector.load %arg5[%12, %c0_12, %c0_13, %c0_14, %c0_15] : memref<2x3x4x1x8xf32, #tpu.memory_space<vmem>>, vector<1x3x4x1x8xf32>
    %14 = vector.shape_cast %13 : vector<1x3x4x1x8xf32> to vector<3x4x1x8xf32>
    %15 = vector.extract_strided_slice %8 {offsets = [0, 0], sizes = [1, 32], strides = [1, 1]} : vector<7x128xf32> to vector<1x32xf32>
    %16 = vector.extract_strided_slice %8 {offsets = [1, 0], sizes = [1, 32], strides = [1, 1]} : vector<7x128xf32> to vector<1x32xf32>
    %cst_16 = arith.constant dense<0.000000e+00> : vector<8xf32>
    %17 = vector.multi_reduction <add>, %5, %cst_16 [1] : vector<8x32xf32> to vector<8xf32>
    %18 = vector.shape_cast %17 : vector<8xf32> to vector<8x1xf32>
    %cst_17 = arith.constant 3.200000e+01 : f32
    %19 = vector.broadcast %cst_17 : f32 to vector<8x1xf32>
    %20 = arith.divf %18, %19 : vector<8x1xf32>
    %21 = vector.broadcast %20 : vector<8x1xf32> to vector<8x32xf32>
    %22 = arith.subf %5, %21 : vector<8x32xf32>
    %23 = arith.mulf %22, %22 : vector<8x32xf32>
    %cst_18 = arith.constant dense<0.000000e+00> : vector<8xf32>
    %24 = vector.multi_reduction <add>, %23, %cst_18 [1] : vector<8x32xf32> to vector<8xf32>
    %25 = vector.shape_cast %24 : vector<8xf32> to vector<8x1xf32>
    %cst_19 = arith.constant 3.200000e+01 : f32
    %26 = vector.broadcast %cst_19 : f32 to vector<8x1xf32>
    %27 = arith.divf %25, %26 : vector<8x1xf32>
    %28 = vector.broadcast %20 : vector<8x1xf32> to vector<8x32xf32>
    %29 = arith.subf %5, %28 : vector<8x32xf32>
    %cst_20 = arith.constant 9.99999996E-13 : f32
    %30 = vector.broadcast %cst_20 : f32 to vector<8x1xf32>
    %31 = arith.addf %27, %30 : vector<8x1xf32>
    %32 = math.rsqrt %31 : vector<8x1xf32>
    %33 = vector.broadcast %32 : vector<8x1xf32> to vector<8x32xf32>
    %34 = arith.mulf %29, %33 : vector<8x32xf32>
    %35 = vector.broadcast %15 : vector<1x32xf32> to vector<8x32xf32>
    %36 = arith.mulf %34, %35 : vector<8x32xf32>
    %37 = vector.broadcast %16 : vector<1x32xf32> to vector<8x32xf32>
    %38 = arith.addf %36, %37 : vector<8x32xf32>
    %39 = arith.truncf %38 : vector<8x32xf32> to vector<8x32xbf16>
    %40 = vector.shape_cast %39 : vector<8x32xbf16> to vector<1x8x32xbf16>
    %41 = vector.shape_cast %40 : vector<1x8x32xbf16> to vector<1x8x32xbf16>
    %42 = vector.broadcast %41 : vector<1x8x32xbf16> to vector<4x8x32xbf16>
    %43 = vector.extract_strided_slice %11 {offsets = [0, 0, 0, 0], sizes = [1, 4, 32, 8], strides = [1, 1, 1, 1]} : vector<4x4x32x8xbf16> to vector<1x4x32x8xbf16>
    %44 = vector.shape_cast %43 : vector<1x4x32x8xbf16> to vector<4x32x8xbf16>
    "tpu.trace_start"() <{level = 10 : i32, message = "hsd,hde->hse"}> : () -> ()
    %cst_21 = arith.constant dense<0.000000e+00> : vector<4x8x8xf32>
    %45 = tpu.matmul %42, %44, %cst_21 {dimension_numbers = #tpu.dot_dimension_numbers<[2], [1], [1], [2], [0, 0, 0, 1, 1, 2], [0], [0]>} : vector<4x8x32xbf16>, vector<4x32x8xbf16>, vector<4x8x8xf32> -> vector<4x8x8xf32>
    "tpu.trace_stop"() : () -> ()
    %46 = vector.extract_strided_slice %14 {offsets = [0, 0, 0, 0], sizes = [1, 4, 1, 8], strides = [1, 1, 1, 1]} : vector<3x4x1x8xf32> to vector<1x4x1x8xf32>
    %47 = vector.shape_cast %46 : vector<1x4x1x8xf32> to vector<4x1x8xf32>
    %48 = vector.broadcast %47 : vector<4x1x8xf32> to vector<4x8x8xf32>
    %49 = arith.addf %45, %48 : vector<4x8x8xf32>
    %50 = vector.extract_strided_slice %11 {offsets = [1, 0, 0, 0], sizes = [1, 4, 32, 8], strides = [1, 1, 1, 1]} : vector<4x4x32x8xbf16> to vector<1x4x32x8xbf16>
    %51 = vector.shape_cast %50 : vector<1x4x32x8xbf16> to vector<4x32x8xbf16>
    "tpu.trace_start"() <{level = 10 : i32, message = "hsd,hde->hse"}> : () -> ()
    %cst_22 = arith.constant dense<0.000000e+00> : vector<4x8x8xf32>
    %52 = tpu.matmul %42, %51, %cst_22 {dimension_numbers = #tpu.dot_dimension_numbers<[2], [1], [1], [2], [0, 0, 0, 1, 1, 2], [0], [0]>} : vector<4x8x32xbf16>, vector<4x32x8xbf16>, vector<4x8x8xf32> -> vector<4x8x8xf32>
    "tpu.trace_stop"() : () -> ()
    %53 = vector.extract_strided_slice %14 {offsets = [1, 0, 0, 0], sizes = [1, 4, 1, 8], strides = [1, 1, 1, 1]} : vector<3x4x1x8xf32> to vector<1x4x1x8xf32>
    %54 = vector.shape_cast %53 : vector<1x4x1x8xf32> to vector<4x1x8xf32>
    %55 = vector.broadcast %54 : vector<4x1x8xf32> to vector<4x8x8xf32>
    %56 = arith.addf %52, %55 : vector<4x8x8xf32>
    %57 = vector.extract_strided_slice %11 {offsets = [2, 0, 0, 0], sizes = [1, 4, 32, 8], strides = [1, 1, 1, 1]} : vector<4x4x32x8xbf16> to vector<1x4x32x8xbf16>
    %58 = vector.shape_cast %57 : vector<1x4x32x8xbf16> to vector<4x32x8xbf16>
    "tpu.trace_start"() <{level = 10 : i32, message = "hsd,hde->hse"}> : () -> ()
    %cst_23 = arith.constant dense<0.000000e+00> : vector<4x8x8xf32>
    %59 = tpu.matmul %42, %58, %cst_23 {dimension_numbers = #tpu.dot_dimension_numbers<[2], [1], [1], [2], [0, 0, 0, 1, 1, 2], [0], [0]>} : vector<4x8x32xbf16>, vector<4x32x8xbf16>, vector<4x8x8xf32> -> vector<4x8x8xf32>
    "tpu.trace_stop"() : () -> ()
    %60 = vector.extract_strided_slice %14 {offsets = [2, 0, 0, 0], sizes = [1, 4, 1, 8], strides = [1, 1, 1, 1]} : vector<3x4x1x8xf32> to vector<1x4x1x8xf32>
    %61 = vector.shape_cast %60 : vector<1x4x1x8xf32> to vector<4x1x8xf32>
    %62 = vector.broadcast %61 : vector<4x1x8xf32> to vector<4x8x8xf32>
    %63 = arith.addf %59, %62 : vector<4x8x8xf32>
    "tpu.trace_start"() <{level = 10 : i32, message = "hqe,hke->hqk"}> : () -> ()
    %cst_24 = arith.constant dense<0.000000e+00> : vector<4x8x8xf32>
    %64 = tpu.matmul %49, %56, %cst_24 {dimension_numbers = #tpu.dot_dimension_numbers<[2], [2], [1], [1], [0, 0, 0, 1, 1, 1], [0], [0]>} : vector<4x8x8xf32>, vector<4x8x8xf32>, vector<4x8x8xf32> -> vector<4x8x8xf32>
    "tpu.trace_stop"() : () -> ()
    %cst_25 = arith.constant 0.353553385 : f32
    %65 = vector.broadcast %cst_25 : f32 to vector<4x8x8xf32>
    %66 = arith.mulf %64, %65 : vector<4x8x8xf32>
    %cst_26 = arith.constant dense<0xFF800000> : vector<4x8xf32>
    %67 = vector.multi_reduction <maximumf>, %66, %cst_26 [2] : vector<4x8x8xf32> to vector<4x8xf32>
    %68 = vector.shape_cast %67 : vector<4x8xf32> to vector<4x8x1xf32>
    %69 = vector.broadcast %68 : vector<4x8x1xf32> to vector<4x8x8xf32>
    %70 = arith.subf %66, %69 : vector<4x8x8xf32>
    %71 = math.exp %70 : vector<4x8x8xf32>
    %cst_27 = arith.constant dense<0.000000e+00> : vector<4x8xf32>
    %72 = vector.multi_reduction <add>, %71, %cst_27 [2] : vector<4x8x8xf32> to vector<4x8xf32>
    %73 = vector.shape_cast %72 : vector<4x8xf32> to vector<4x8x1xf32>
    %74 = tpu.reciprocal %73 {approx = true} : vector<4x8x1xf32> -> vector<4x8x1xf32>
    %75 = vector.broadcast %74 : vector<4x8x1xf32> to vector<4x8x8xf32>
    %76 = arith.mulf %71, %75 : vector<4x8x8xf32>
    "tpu.trace_start"() <{level = 10 : i32, message = "hqk,hke->hqe"}> : () -> ()
    %cst_28 = arith.constant dense<0.000000e+00> : vector<4x8x8xf32>
    %77 = tpu.matmul %76, %63, %cst_28 {dimension_numbers = #tpu.dot_dimension_numbers<[2], [1], [1], [2], [0, 0, 0, 1, 1, 2], [0], [0]>} : vector<4x8x8xf32>, vector<4x8x8xf32>, vector<4x8x8xf32> -> vector<4x8x8xf32>
    "tpu.trace_stop"() : () -> ()
    %78 = arith.truncf %77 : vector<4x8x8xf32> to vector<4x8x8xbf16>
    %79 = vector.extract_strided_slice %11 {offsets = [3, 0, 0, 0], sizes = [1, 4, 32, 8], strides = [1, 1, 1, 1]} : vector<4x4x32x8xbf16> to vector<1x4x32x8xbf16>
    %80 = vector.shape_cast %79 : vector<1x4x32x8xbf16> to vector<4x32x8xbf16>
    "tpu.trace_start"() <{level = 10 : i32, message = "hqe,hde->hqd"}> : () -> ()
    %cst_29 = arith.constant dense<0.000000e+00> : vector<4x8x32xf32>
    %81 = tpu.matmul %78, %80, %cst_29 {dimension_numbers = #tpu.dot_dimension_numbers<[2], [2], [1], [1], [0, 0, 0, 1, 1, 1], [0], [0]>} : vector<4x8x8xbf16>, vector<4x32x8xbf16>, vector<4x8x32xf32> -> vector<4x8x32xf32>
    "tpu.trace_stop"() : () -> ()
    %cst_30 = arith.constant dense<0.000000e+00> : vector<8x32xf32>
    %82 = vector.multi_reduction <add>, %81, %cst_30 [0] : vector<4x8x32xf32> to vector<8x32xf32>
    %83 = vector.extract_strided_slice %8 {offsets = [4, 0], sizes = [1, 32], strides = [1, 1]} : vector<7x128xf32> to vector<1x32xf32>
    %84 = vector.broadcast %83 : vector<1x32xf32> to vector<8x32xf32>
    %85 = arith.addf %82, %84 : vector<8x32xf32>
    %86 = arith.addf %5, %85 : vector<8x32xf32>
    %87 = vector.extract_strided_slice %8 {offsets = [2, 0], sizes = [1, 32], strides = [1, 1]} : vector<7x128xf32> to vector<1x32xf32>
    %88 = vector.extract_strided_slice %8 {offsets = [3, 0], sizes = [1, 32], strides = [1, 1]} : vector<7x128xf32> to vector<1x32xf32>
    %cst_31 = arith.constant dense<0.000000e+00> : vector<8xf32>
    %89 = vector.multi_reduction <add>, %86, %cst_31 [1] : vector<8x32xf32> to vector<8xf32>
    %90 = vector.shape_cast %89 : vector<8xf32> to vector<8x1xf32>
    %cst_32 = arith.constant 3.200000e+01 : f32
    %91 = vector.broadcast %cst_32 : f32 to vector<8x1xf32>
    %92 = arith.divf %90, %91 : vector<8x1xf32>
    %93 = vector.broadcast %92 : vector<8x1xf32> to vector<8x32xf32>
    %94 = arith.subf %86, %93 : vector<8x32xf32>
    %95 = arith.mulf %94, %94 : vector<8x32xf32>
    %cst_33 = arith.constant dense<0.000000e+00> : vector<8xf32>
    %96 = vector.multi_reduction <add>, %95, %cst_33 [1] : vector<8x32xf32> to vector<8xf32>
    %97 = vector.shape_cast %96 : vector<8xf32> to vector<8x1xf32>
    %cst_34 = arith.constant 3.200000e+01 : f32
    %98 = vector.broadcast %cst_34 : f32 to vector<8x1xf32>
    %99 = arith.divf %97, %98 : vector<8x1xf32>
    %100 = vector.broadcast %92 : vector<8x1xf32> to vector<8x32xf32>
    %101 = arith.subf %86, %100 : vector<8x32xf32>
    %cst_35 = arith.constant 9.99999996E-13 : f32
    %102 = vector.broadcast %cst_35 : f32 to vector<8x1xf32>
    %103 = arith.addf %99, %102 : vector<8x1xf32>
    %104 = math.rsqrt %103 : vector<8x1xf32>
    %105 = vector.broadcast %104 : vector<8x1xf32> to vector<8x32xf32>
    %106 = arith.mulf %101, %105 : vector<8x32xf32>
    %107 = vector.broadcast %87 : vector<1x32xf32> to vector<8x32xf32>
    %108 = arith.mulf %106, %107 : vector<8x32xf32>
    %109 = vector.broadcast %88 : vector<1x32xf32> to vector<8x32xf32>
    %110 = arith.addf %108, %109 : vector<8x32xf32>
    %111 = arith.truncf %110 : vector<8x32xf32> to vector<8x32xbf16>
    %112 = arith.index_cast %c0_i32 : i32 to index
    %c0_36 = arith.constant 0 : index
    %c0_37 = arith.constant 0 : index
    %113 = vector.load %arg6[%112, %c0_36, %c0_37] : memref<2x32x128xbf16, #tpu.memory_space<vmem>>, vector<1x32x128xbf16>
    %114 = vector.shape_cast %113 : vector<1x32x128xbf16> to vector<32x128xbf16>
    %cst_38 = arith.constant dense<0.000000e+00> : vector<8x128xf32>
    %115 = tpu.matmul %111, %114, %cst_38 {dimension_numbers = #tpu.dot_dimension_numbers<[1], [0], [0], [1], [0, 0, 1, 1], [], []>} : vector<8x32xbf16>, vector<32x128xbf16>, vector<8x128xf32> -> vector<8x128xf32>
    %116 = vector.extract_strided_slice %8 {offsets = [5, 0], sizes = [1, 128], strides = [1, 1]} : vector<7x128xf32> to vector<1x128xf32>
    %117 = vector.broadcast %116 : vector<1x128xf32> to vector<8x128xf32>
    %118 = arith.addf %115, %117 : vector<8x128xf32>
    %119 = arith.mulf %118, %118 : vector<8x128xf32>
    %120 = arith.mulf %118, %119 : vector<8x128xf32>
    %cst_39 = arith.constant 4.471500e-02 : f32
    %121 = vector.broadcast %cst_39 : f32 to vector<8x128xf32>
    %122 = arith.mulf %121, %120 : vector<8x128xf32>
    %123 = arith.addf %118, %122 : vector<8x128xf32>
    %cst_40 = arith.constant 0.797884583 : f32
    %124 = vector.broadcast %cst_40 : f32 to vector<8x128xf32>
    %125 = arith.mulf %124, %123 : vector<8x128xf32>
    %126 = math.tanh %125 : vector<8x128xf32>
    %cst_41 = arith.constant 1.000000e+00 : f32
    %127 = vector.broadcast %cst_41 : f32 to vector<8x128xf32>
    %128 = arith.addf %127, %126 : vector<8x128xf32>
    %cst_42 = arith.constant 5.000000e-01 : f32
    %129 = vector.broadcast %cst_42 : f32 to vector<8x128xf32>
    %130 = arith.mulf %129, %128 : vector<8x128xf32>
    %131 = arith.mulf %118, %130 : vector<8x128xf32>
    %132 = arith.truncf %131 : vector<8x128xf32> to vector<8x128xbf16>
    %133 = arith.index_cast %c0_i32 : i32 to index
    %c0_43 = arith.constant 0 : index
    %c0_44 = arith.constant 0 : index
    %134 = vector.load %arg7[%133, %c0_43, %c0_44] : memref<2x128x32xbf16, #tpu.memory_space<vmem>>, vector<1x128x32xbf16>
    %135 = vector.shape_cast %134 : vector<1x128x32xbf16> to vector<128x32xbf16>
    %cst_45 = arith.constant dense<0.000000e+00> : vector<8x32xf32>
    %136 = tpu.matmul %132, %135, %cst_45 {dimension_numbers = #tpu.dot_dimension_numbers<[1], [0], [0], [1], [0, 0, 1, 1], [], []>} : vector<8x128xbf16>, vector<128x32xbf16>, vector<8x32xf32> -> vector<8x32xf32>
    %137 = vector.extract_strided_slice %8 {offsets = [6, 0], sizes = [1, 32], strides = [1, 1]} : vector<7x128xf32> to vector<1x32xf32>
    %138 = vector.broadcast %137 : vector<1x32xf32> to vector<8x32xf32>
    %139 = arith.addf %136, %138 : vector<8x32xf32>
    %140 = arith.addf %86, %139 : vector<8x32xf32>
    %c1_i32 = arith.constant 1 : i32
    %141 = arith.index_cast %c1_i32 : i32 to index
    %c0_46 = arith.constant 0 : index
    %c0_47 = arith.constant 0 : index
    %142 = vector.load %arg8[%141, %c0_46, %c0_47] : memref<2x7x128xf32, #tpu.memory_space<vmem>>, vector<1x7x128xf32>
    %143 = vector.shape_cast %142 : vector<1x7x128xf32> to vector<7x128xf32>
    %144 = arith.index_cast %c1_i32 : i32 to index
    %c0_48 = arith.constant 0 : index
    %c0_49 = arith.constant 0 : index
    %c0_50 = arith.constant 0 : index
    %c0_51 = arith.constant 0 : index
    %145 = vector.load %arg4[%144, %c0_48, %c0_49, %c0_50, %c0_51] : memref<2x4x4x32x8xbf16, #tpu.memory_space<vmem>>, vector<1x4x4x32x8xbf16>
    %146 = vector.shape_cast %145 : vector<1x4x4x32x8xbf16> to vector<4x4x32x8xbf16>
    %147 = arith.index_cast %c1_i32 : i32 to index
    %c0_52 = arith.constant 0 : index
    %c0_53 = arith.constant 0 : index
    %c0_54 = arith.constant 0 : index
    %c0_55 = arith.constant 0 : index
    %148 = vector.load %arg5[%147, %c0_52, %c0_53, %c0_54, %c0_55] : memref<2x3x4x1x8xf32, #tpu.memory_space<vmem>>, vector<1x3x4x1x8xf32>
    %149 = vector.shape_cast %148 : vector<1x3x4x1x8xf32> to vector<3x4x1x8xf32>
    %150 = vector.extract_strided_slice %143 {offsets = [0, 0], sizes = [1, 32], strides = [1, 1]} : vector<7x128xf32> to vector<1x32xf32>
    %151 = vector.extract_strided_slice %143 {offsets = [1, 0], sizes = [1, 32], strides = [1, 1]} : vector<7x128xf32> to vector<1x32xf32>
    %cst_56 = arith.constant dense<0.000000e+00> : vector<8xf32>
    %152 = vector.multi_reduction <add>, %140, %cst_56 [1] : vector<8x32xf32> to vector<8xf32>
    %153 = vector.shape_cast %152 : vector<8xf32> to vector<8x1xf32>
    %cst_57 = arith.constant 3.200000e+01 : f32
    %154 = vector.broadcast %cst_57 : f32 to vector<8x1xf32>
    %155 = arith.divf %153, %154 : vector<8x1xf32>
    %156 = vector.broadcast %155 : vector<8x1xf32> to vector<8x32xf32>
    %157 = arith.subf %140, %156 : vector<8x32xf32>
    %158 = arith.mulf %157, %157 : vector<8x32xf32>
    %cst_58 = arith.constant dense<0.000000e+00> : vector<8xf32>
    %159 = vector.multi_reduction <add>, %158, %cst_58 [1] : vector<8x32xf32> to vector<8xf32>
    %160 = vector.shape_cast %159 : vector<8xf32> to vector<8x1xf32>
    %cst_59 = arith.constant 3.200000e+01 : f32
    %161 = vector.broadcast %cst_59 : f32 to vector<8x1xf32>
    %162 = arith.divf %160, %161 : vector<8x1xf32>
    %163 = vector.broadcast %155 : vector<8x1xf32> to vector<8x32xf32>
    %164 = arith.subf %140, %163 : vector<8x32xf32>
    %cst_60 = arith.constant 9.99999996E-13 : f32
    %165 = vector.broadcast %cst_60 : f32 to vector<8x1xf32>
    %166 = arith.addf %162, %165 : vector<8x1xf32>
    %167 = math.rsqrt %166 : vector<8x1xf32>
    %168 = vector.broadcast %167 : vector<8x1xf32> to vector<8x32xf32>
    %169 = arith.mulf %164, %168 : vector<8x32xf32>
    %170 = vector.broadcast %150 : vector<1x32xf32> to vector<8x32xf32>
    %171 = arith.mulf %169, %170 : vector<8x32xf32>
    %172 = vector.broadcast %151 : vector<1x32xf32> to vector<8x32xf32>
    %173 = arith.addf %171, %172 : vector<8x32xf32>
    %174 = arith.truncf %173 : vector<8x32xf32> to vector<8x32xbf16>
    %175 = vector.shape_cast %174 : vector<8x32xbf16> to vector<1x8x32xbf16>
    %176 = vector.shape_cast %175 : vector<1x8x32xbf16> to vector<1x8x32xbf16>
    %177 = vector.broadcast %176 : vector<1x8x32xbf16> to vector<4x8x32xbf16>
    %178 = vector.extract_strided_slice %146 {offsets = [0, 0, 0, 0], sizes = [1, 4, 32, 8], strides = [1, 1, 1, 1]} : vector<4x4x32x8xbf16> to vector<1x4x32x8xbf16>
    %179 = vector.shape_cast %178 : vector<1x4x32x8xbf16> to vector<4x32x8xbf16>
    "tpu.trace_start"() <{level = 10 : i32, message = "hsd,hde->hse"}> : () -> ()
    %cst_61 = arith.constant dense<0.000000e+00> : vector<4x8x8xf32>
    %180 = tpu.matmul %177, %179, %cst_61 {dimension_numbers = #tpu.dot_dimension_numbers<[2], [1], [1], [2], [0, 0, 0, 1, 1, 2], [0], [0]>} : vector<4x8x32xbf16>, vector<4x32x8xbf16>, vector<4x8x8xf32> -> vector<4x8x8xf32>
    "tpu.trace_stop"() : () -> ()
    %181 = vector.extract_strided_slice %149 {offsets = [0, 0, 0, 0], sizes = [1, 4, 1, 8], strides = [1, 1, 1, 1]} : vector<3x4x1x8xf32> to vector<1x4x1x8xf32>
    %182 = vector.shape_cast %181 : vector<1x4x1x8xf32> to vector<4x1x8xf32>
    %183 = vector.broadcast %182 : vector<4x1x8xf32> to vector<4x8x8xf32>
    %184 = arith.addf %180, %183 : vector<4x8x8xf32>
    %185 = vector.extract_strided_slice %146 {offsets = [1, 0, 0, 0], sizes = [1, 4, 32, 8], strides = [1, 1, 1, 1]} : vector<4x4x32x8xbf16> to vector<1x4x32x8xbf16>
    %186 = vector.shape_cast %185 : vector<1x4x32x8xbf16> to vector<4x32x8xbf16>
    "tpu.trace_start"() <{level = 10 : i32, message = "hsd,hde->hse"}> : () -> ()
    %cst_62 = arith.constant dense<0.000000e+00> : vector<4x8x8xf32>
    %187 = tpu.matmul %177, %186, %cst_62 {dimension_numbers = #tpu.dot_dimension_numbers<[2], [1], [1], [2], [0, 0, 0, 1, 1, 2], [0], [0]>} : vector<4x8x32xbf16>, vector<4x32x8xbf16>, vector<4x8x8xf32> -> vector<4x8x8xf32>
    "tpu.trace_stop"() : () -> ()
    %188 = vector.extract_strided_slice %149 {offsets = [1, 0, 0, 0], sizes = [1, 4, 1, 8], strides = [1, 1, 1, 1]} : vector<3x4x1x8xf32> to vector<1x4x1x8xf32>
    %189 = vector.shape_cast %188 : vector<1x4x1x8xf32> to vector<4x1x8xf32>
    %190 = vector.broadcast %189 : vector<4x1x8xf32> to vector<4x8x8xf32>
    %191 = arith.addf %187, %190 : vector<4x8x8xf32>
    %192 = vector.extract_strided_slice %146 {offsets = [2, 0, 0, 0], sizes = [1, 4, 32, 8], strides = [1, 1, 1, 1]} : vector<4x4x32x8xbf16> to vector<1x4x32x8xbf16>
    %193 = vector.shape_cast %192 : vector<1x4x32x8xbf16> to vector<4x32x8xbf16>
    "tpu.trace_start"() <{level = 10 : i32, message = "hsd,hde->hse"}> : () -> ()
    %cst_63 = arith.constant dense<0.000000e+00> : vector<4x8x8xf32>
    %194 = tpu.matmul %177, %193, %cst_63 {dimension_numbers = #tpu.dot_dimension_numbers<[2], [1], [1], [2], [0, 0, 0, 1, 1, 2], [0], [0]>} : vector<4x8x32xbf16>, vector<4x32x8xbf16>, vector<4x8x8xf32> -> vector<4x8x8xf32>
    "tpu.trace_stop"() : () -> ()
    %195 = vector.extract_strided_slice %149 {offsets = [2, 0, 0, 0], sizes = [1, 4, 1, 8], strides = [1, 1, 1, 1]} : vector<3x4x1x8xf32> to vector<1x4x1x8xf32>
    %196 = vector.shape_cast %195 : vector<1x4x1x8xf32> to vector<4x1x8xf32>
    %197 = vector.broadcast %196 : vector<4x1x8xf32> to vector<4x8x8xf32>
    %198 = arith.addf %194, %197 : vector<4x8x8xf32>
    "tpu.trace_start"() <{level = 10 : i32, message = "hqe,hke->hqk"}> : () -> ()
    %cst_64 = arith.constant dense<0.000000e+00> : vector<4x8x8xf32>
    %199 = tpu.matmul %184, %191, %cst_64 {dimension_numbers = #tpu.dot_dimension_numbers<[2], [2], [1], [1], [0, 0, 0, 1, 1, 1], [0], [0]>} : vector<4x8x8xf32>, vector<4x8x8xf32>, vector<4x8x8xf32> -> vector<4x8x8xf32>
    "tpu.trace_stop"() : () -> ()
    %cst_65 = arith.constant 0.353553385 : f32
    %200 = vector.broadcast %cst_65 : f32 to vector<4x8x8xf32>
    %201 = arith.mulf %199, %200 : vector<4x8x8xf32>
    %cst_66 = arith.constant dense<0xFF800000> : vector<4x8xf32>
    %202 = vector.multi_reduction <maximumf>, %201, %cst_66 [2] : vector<4x8x8xf32> to vector<4x8xf32>
    %203 = vector.shape_cast %202 : vector<4x8xf32> to vector<4x8x1xf32>
    %204 = vector.broadcast %203 : vector<4x8x1xf32> to vector<4x8x8xf32>
    %205 = arith.subf %201, %204 : vector<4x8x8xf32>
    %206 = math.exp %205 : vector<4x8x8xf32>
    %cst_67 = arith.constant dense<0.000000e+00> : vector<4x8xf32>
    %207 = vector.multi_reduction <add>, %206, %cst_67 [2] : vector<4x8x8xf32> to vector<4x8xf32>
    %208 = vector.shape_cast %207 : vector<4x8xf32> to vector<4x8x1xf32>
    %209 = tpu.reciprocal %208 {approx = true} : vector<4x8x1xf32> -> vector<4x8x1xf32>
    %210 = vector.broadcast %209 : vector<4x8x1xf32> to vector<4x8x8xf32>
    %211 = arith.mulf %206, %210 : vector<4x8x8xf32>
    "tpu.trace_start"() <{level = 10 : i32, message = "hqk,hke->hqe"}> : () -> ()
    %cst_68 = arith.constant dense<0.000000e+00> : vector<4x8x8xf32>
    %212 = tpu.matmul %211, %198, %cst_68 {dimension_numbers = #tpu.dot_dimension_numbers<[2], [1], [1], [2], [0, 0, 0, 1, 1, 2], [0], [0]>} : vector<4x8x8xf32>, vector<4x8x8xf32>, vector<4x8x8xf32> -> vector<4x8x8xf32>
    "tpu.trace_stop"() : () -> ()
    %213 = arith.truncf %212 : vector<4x8x8xf32> to vector<4x8x8xbf16>
    %214 = vector.extract_strided_slice %146 {offsets = [3, 0, 0, 0], sizes = [1, 4, 32, 8], strides = [1, 1, 1, 1]} : vector<4x4x32x8xbf16> to vector<1x4x32x8xbf16>
    %215 = vector.shape_cast %214 : vector<1x4x32x8xbf16> to vector<4x32x8xbf16>
    "tpu.trace_start"() <{level = 10 : i32, message = "hqe,hde->hqd"}> : () -> ()
    %cst_69 = arith.constant dense<0.000000e+00> : vector<4x8x32xf32>
    %216 = tpu.matmul %213, %215, %cst_69 {dimension_numbers = #tpu.dot_dimension_numbers<[2], [2], [1], [1], [0, 0, 0, 1, 1, 1], [0], [0]>} : vector<4x8x8xbf16>, vector<4x32x8xbf16>, vector<4x8x32xf32> -> vector<4x8x32xf32>
    "tpu.trace_stop"() : () -> ()
    %cst_70 = arith.constant dense<0.000000e+00> : vector<8x32xf32>
    %217 = vector.multi_reduction <add>, %216, %cst_70 [0] : vector<4x8x32xf32> to vector<8x32xf32>
    %218 = vector.extract_strided_slice %143 {offsets = [4, 0], sizes = [1, 32], strides = [1, 1]} : vector<7x128xf32> to vector<1x32xf32>
    %219 = vector.broadcast %218 : vector<1x32xf32> to vector<8x32xf32>
    %220 = arith.addf %217, %219 : vector<8x32xf32>
    %221 = arith.addf %140, %220 : vector<8x32xf32>
    %222 = vector.extract_strided_slice %143 {offsets = [2, 0], sizes = [1, 32], strides = [1, 1]} : vector<7x128xf32> to vector<1x32xf32>
    %223 = vector.extract_strided_slice %143 {offsets = [3, 0], sizes = [1, 32], strides = [1, 1]} : vector<7x128xf32> to vector<1x32xf32>
    %cst_71 = arith.constant dense<0.000000e+00> : vector<8xf32>
    %224 = vector.multi_reduction <add>, %221, %cst_71 [1] : vector<8x32xf32> to vector<8xf32>
    %225 = vector.shape_cast %224 : vector<8xf32> to vector<8x1xf32>
    %cst_72 = arith.constant 3.200000e+01 : f32
    %226 = vector.broadcast %cst_72 : f32 to vector<8x1xf32>
    %227 = arith.divf %225, %226 : vector<8x1xf32>
    %228 = vector.broadcast %227 : vector<8x1xf32> to vector<8x32xf32>
    %229 = arith.subf %221, %228 : vector<8x32xf32>
    %230 = arith.mulf %229, %229 : vector<8x32xf32>
    %cst_73 = arith.constant dense<0.000000e+00> : vector<8xf32>
    %231 = vector.multi_reduction <add>, %230, %cst_73 [1] : vector<8x32xf32> to vector<8xf32>
    %232 = vector.shape_cast %231 : vector<8xf32> to vector<8x1xf32>
    %cst_74 = arith.constant 3.200000e+01 : f32
    %233 = vector.broadcast %cst_74 : f32 to vector<8x1xf32>
    %234 = arith.divf %232, %233 : vector<8x1xf32>
    %235 = vector.broadcast %227 : vector<8x1xf32> to vector<8x32xf32>
    %236 = arith.subf %221, %235 : vector<8x32xf32>
    %cst_75 = arith.constant 9.99999996E-13 : f32
    %237 = vector.broadcast %cst_75 : f32 to vector<8x1xf32>
    %238 = arith.addf %234, %237 : vector<8x1xf32>
    %239 = math.rsqrt %238 : vector<8x1xf32>
    %240 = vector.broadcast %239 : vector<8x1xf32> to vector<8x32xf32>
    %241 = arith.mulf %236, %240 : vector<8x32xf32>
    %242 = vector.broadcast %222 : vector<1x32xf32> to vector<8x32xf32>
    %243 = arith.mulf %241, %242 : vector<8x32xf32>
    %244 = vector.broadcast %223 : vector<1x32xf32> to vector<8x32xf32>
    %245 = arith.addf %243, %244 : vector<8x32xf32>
    %246 = arith.truncf %245 : vector<8x32xf32> to vector<8x32xbf16>
    %247 = arith.index_cast %c1_i32 : i32 to index
    %c0_76 = arith.constant 0 : index
    %c0_77 = arith.constant 0 : index
    %248 = vector.load %arg6[%247, %c0_76, %c0_77] : memref<2x32x128xbf16, #tpu.memory_space<vmem>>, vector<1x32x128xbf16>
    %249 = vector.shape_cast %248 : vector<1x32x128xbf16> to vector<32x128xbf16>
    %cst_78 = arith.constant dense<0.000000e+00> : vector<8x128xf32>
    %250 = tpu.matmul %246, %249, %cst_78 {dimension_numbers = #tpu.dot_dimension_numbers<[1], [0], [0], [1], [0, 0, 1, 1], [], []>} : vector<8x32xbf16>, vector<32x128xbf16>, vector<8x128xf32> -> vector<8x128xf32>
    %251 = vector.extract_strided_slice %143 {offsets = [5, 0], sizes = [1, 128], strides = [1, 1]} : vector<7x128xf32> to vector<1x128xf32>
    %252 = vector.broadcast %251 : vector<1x128xf32> to vector<8x128xf32>
    %253 = arith.addf %250, %252 : vector<8x128xf32>
    %254 = arith.mulf %253, %253 : vector<8x128xf32>
    %255 = arith.mulf %253, %254 : vector<8x128xf32>
    %cst_79 = arith.constant 4.471500e-02 : f32
    %256 = vector.broadcast %cst_79 : f32 to vector<8x128xf32>
    %257 = arith.mulf %256, %255 : vector<8x128xf32>
    %258 = arith.addf %253, %257 : vector<8x128xf32>
    %cst_80 = arith.constant 0.797884583 : f32
    %259 = vector.broadcast %cst_80 : f32 to vector<8x128xf32>
    %260 = arith.mulf %259, %258 : vector<8x128xf32>
    %261 = math.tanh %260 : vector<8x128xf32>
    %cst_81 = arith.constant 1.000000e+00 : f32
    %262 = vector.broadcast %cst_81 : f32 to vector<8x128xf32>
    %263 = arith.addf %262, %261 : vector<8x128xf32>
    %cst_82 = arith.constant 5.000000e-01 : f32
    %264 = vector.broadcast %cst_82 : f32 to vector<8x128xf32>
    %265 = arith.mulf %264, %263 : vector<8x128xf32>
    %266 = arith.mulf %253, %265 : vector<8x128xf32>
    %267 = arith.truncf %266 : vector<8x128xf32> to vector<8x128xbf16>
    %268 = arith.index_cast %c1_i32 : i32 to index
    %c0_83 = arith.constant 0 : index
    %c0_84 = arith.constant 0 : index
    %269 = vector.load %arg7[%268, %c0_83, %c0_84] : memref<2x128x32xbf16, #tpu.memory_space<vmem>>, vector<1x128x32xbf16>
    %270 = vector.shape_cast %269 : vector<1x128x32xbf16> to vector<128x32xbf16>
    %cst_85 = arith.constant dense<0.000000e+00> : vector<8x32xf32>
    %271 = tpu.matmul %267, %270, %cst_85 {dimension_numbers = #tpu.dot_dimension_numbers<[1], [0], [0], [1], [0, 0, 1, 1], [], []>} : vector<8x128xbf16>, vector<128x32xbf16>, vector<8x32xf32> -> vector<8x32xf32>
    %272 = vector.extract_strided_slice %143 {offsets = [6, 0], sizes = [1, 32], strides = [1, 1]} : vector<7x128xf32> to vector<1x32xf32>
    %273 = vector.broadcast %272 : vector<1x32xf32> to vector<8x32xf32>
    %274 = arith.addf %271, %273 : vector<8x32xf32>
    %275 = arith.addf %221, %274 : vector<8x32xf32>
    %c2_i32 = arith.constant 2 : i32
    %c0_86 = arith.constant 0 : index
    %c0_87 = arith.constant 0 : index
    %276 = vector.load %arg9[%c0_86, %c0_87] : memref<37x128xf32, #tpu.memory_space<vmem>>, vector<37x128xf32>
    %277 = vector.extract_strided_slice %276 {offsets = [33, 0], sizes = [1, 32], strides = [1, 1]} : vector<37x128xf32> to vector<1x32xf32>
    %278 = vector.extract_strided_slice %276 {offsets = [34, 0], sizes = [1, 32], strides = [1, 1]} : vector<37x128xf32> to vector<1x32xf32>
    %cst_88 = arith.constant dense<0.000000e+00> : vector<8xf32>
    %279 = vector.multi_reduction <add>, %275, %cst_88 [1] : vector<8x32xf32> to vector<8xf32>
    %280 = vector.shape_cast %279 : vector<8xf32> to vector<8x1xf32>
    %cst_89 = arith.constant 3.200000e+01 : f32
    %281 = vector.broadcast %cst_89 : f32 to vector<8x1xf32>
    %282 = arith.divf %280, %281 : vector<8x1xf32>
    %283 = vector.broadcast %282 : vector<8x1xf32> to vector<8x32xf32>
    %284 = arith.subf %275, %283 : vector<8x32xf32>
    %285 = arith.mulf %284, %284 : vector<8x32xf32>
    %cst_90 = arith.constant dense<0.000000e+00> : vector<8xf32>
    %286 = vector.multi_reduction <add>, %285, %cst_90 [1] : vector<8x32xf32> to vector<8xf32>
    %287 = vector.shape_cast %286 : vector<8xf32> to vector<8x1xf32>
    %cst_91 = arith.constant 3.200000e+01 : f32
    %288 = vector.broadcast %cst_91 : f32 to vector<8x1xf32>
    %289 = arith.divf %287, %288 : vector<8x1xf32>
    %290 = vector.broadcast %282 : vector<8x1xf32> to vector<8x32xf32>
    %291 = arith.subf %275, %290 : vector<8x32xf32>
    %cst_92 = arith.constant 9.99999996E-13 : f32
    %292 = vector.broadcast %cst_92 : f32 to vector<8x1xf32>
    %293 = arith.addf %289, %292 : vector<8x1xf32>
    %294 = math.rsqrt %293 : vector<8x1xf32>
    %295 = vector.broadcast %294 : vector<8x1xf32> to vector<8x32xf32>
    %296 = arith.mulf %291, %295 : vector<8x32xf32>
    %297 = vector.broadcast %277 : vector<1x32xf32> to vector<8x32xf32>
    %298 = arith.mulf %296, %297 : vector<8x32xf32>
    %299 = vector.broadcast %278 : vector<1x32xf32> to vector<8x32xf32>
    %300 = arith.addf %298, %299 : vector<8x32xf32>
    %301 = vector.extract_strided_slice %300 {offsets = [0, 0], sizes = [1, 32], strides = [1, 1]} : vector<8x32xf32> to vector<1x32xf32>
    %302 = vector.extract_strided_slice %300 {offsets = [1, 0], sizes = [1, 32], strides = [1, 1]} : vector<8x32xf32> to vector<1x32xf32>
    %303 = arith.addf %301, %302 : vector<1x32xf32>
    %cst_93 = arith.constant 5.000000e-01 : f32
    %304 = vector.broadcast %cst_93 : f32 to vector<1x32xf32>
    %305 = arith.mulf %303, %304 : vector<1x32xf32>
    %306 = vector.extract_strided_slice %276 {offsets = [35, 0], sizes = [1, 32], strides = [1, 1]} : vector<37x128xf32> to vector<1x32xf32>
    %307 = vector.extract_strided_slice %276 {offsets = [36, 0], sizes = [1, 32], strides = [1, 1]} : vector<37x128xf32> to vector<1x32xf32>
    %cst_94 = arith.constant dense<0.000000e+00> : vector<1xf32>
    %308 = vector.multi_reduction <add>, %305, %cst_94 [1] : vector<1x32xf32> to vector<1xf32>
    %309 = vector.shape_cast %308 : vector<1xf32> to vector<1x1xf32>
    %cst_95 = arith.constant 3.200000e+01 : f32
    %310 = vector.broadcast %cst_95 : f32 to vector<1x1xf32>
    %311 = arith.divf %309, %310 : vector<1x1xf32>
    %312 = vector.broadcast %311 : vector<1x1xf32> to vector<1x32xf32>
    %313 = arith.subf %305, %312 : vector<1x32xf32>
    %314 = arith.mulf %313, %313 : vector<1x32xf32>
    %cst_96 = arith.constant dense<0.000000e+00> : vector<1xf32>
    %315 = vector.multi_reduction <add>, %314, %cst_96 [1] : vector<1x32xf32> to vector<1xf32>
    %316 = vector.shape_cast %315 : vector<1xf32> to vector<1x1xf32>
    %cst_97 = arith.constant 3.200000e+01 : f32
    %317 = vector.broadcast %cst_97 : f32 to vector<1x1xf32>
    %318 = arith.divf %316, %317 : vector<1x1xf32>
    %319 = vector.broadcast %311 : vector<1x1xf32> to vector<1x32xf32>
    %320 = arith.subf %305, %319 : vector<1x32xf32>
    %cst_98 = arith.constant 9.99999996E-13 : f32
    %321 = vector.broadcast %cst_98 : f32 to vector<1x1xf32>
    %322 = arith.addf %318, %321 : vector<1x1xf32>
    %323 = math.rsqrt %322 : vector<1x1xf32>
    %324 = vector.broadcast %323 : vector<1x1xf32> to vector<1x32xf32>
    %325 = arith.mulf %320, %324 : vector<1x32xf32>
    %326 = arith.mulf %325, %306 : vector<1x32xf32>
    %327 = arith.addf %326, %307 : vector<1x32xf32>
    %328 = vector.extract_strided_slice %276 {offsets = [0, 0], sizes = [32, 128], strides = [1, 1]} : vector<37x128xf32> to vector<32x128xf32>
    %cst_99 = arith.constant dense<0.000000e+00> : vector<1x128xf32>
    %329 = tpu.matmul %327, %328, %cst_99 {dimension_numbers = #tpu.dot_dimension_numbers<[1], [0], [0], [1], [0, 0, 1, 1], [], []>} : vector<1x32xf32>, vector<32x128xf32>, vector<1x128xf32> -> vector<1x128xf32>
    %330 = vector.extract_strided_slice %276 {offsets = [32, 0], sizes = [1, 128], strides = [1, 1]} : vector<37x128xf32> to vector<1x128xf32>
    %331 = arith.addf %329, %330 : vector<1x128xf32>
    %332 = vector.shape_cast %331 : vector<1x128xf32> to vector<1x1x128xf32>
    %c0_100 = arith.constant 0 : index
    %c0_101 = arith.constant 0 : index
    %c0_102 = arith.constant 0 : index
    %333 = vector.load %arg10[%c0_100, %c0_101, %c0_102] : memref<1x1x128xf32, #tpu.memory_space<vmem>>, vector<1x1x128xf32>
    tpu.vector_store %arg10[%c0_100, %c0_101, %c0_102], %332 {strides = array<i32>} : memref<1x1x128xf32, #tpu.memory_space<vmem>>, vector<1x1x128xf32>,
    %334 = vector.extract_strided_slice %275 {offsets = [0, 0], sizes = [1, 32], strides = [1, 1]} : vector<8x32xf32> to vector<1x32xf32>
    %335 = vector.shape_cast %334 : vector<1x32xf32> to vector<1x1x32xf32>
    %c0_103 = arith.constant 0 : index
    %c0_104 = arith.constant 0 : index
    %c0_105 = arith.constant 0 : index
    %336 = vector.load %arg11[%c0_103, %c0_104, %c0_105] : memref<1x1x32xf32, #tpu.memory_space<vmem>>, vector<1x1x32xf32>
    tpu.vector_store %arg11[%c0_103, %c0_104, %c0_105], %335 {strides = array<i32>} : memref<1x1x32xf32, #tpu.memory_space<vmem>>, vector<1x1x32xf32>,
    return
  }
  func.func @transform_0(%arg0: i32) -> (i32, i32, i32) {
    %c0_i32 = arith.constant 0 : i32
    %c0_i32_0 = arith.constant 0 : i32
    %c0_i32_1 = arith.constant 0 : i32
    return %arg0, %c0_i32, %c0_i32_0 : i32, i32, i32
  }
  func.func @transform_1(%arg0: i32) -> (i32, i32) {
    %c0_i32 = arith.constant 0 : i32
    %c0_i32_0 = arith.constant 0 : i32
    %c0_i32_1 = arith.constant 0 : i32
    return %c0_i32, %c0_i32_0 : i32, i32
  }
  func.func @transform_2(%arg0: i32) -> (i32, i32) {
    %c0_i32 = arith.constant 0 : i32
    %c0_i32_0 = arith.constant 0 : i32
    %c0_i32_1 = arith.constant 0 : i32
    return %c0_i32, %c0_i32_0 : i32, i32
  }
  func.func @transform_3(%arg0: i32) -> (i32, i32, i32, i32, i32) {
    %c0_i32 = arith.constant 0 : i32
    %c0_i32_0 = arith.constant 0 : i32
    %c0_i32_1 = arith.constant 0 : i32
    %c0_i32_2 = arith.constant 0 : i32
    %c0_i32_3 = arith.constant 0 : i32
    %c0_i32_4 = arith.constant 0 : i32
    return %c0_i32, %c0_i32_0, %c0_i32_1, %c0_i32_2, %c0_i32_3 : i32, i32, i32, i32, i32
  }
  func.func @transform_4(%arg0: i32) -> (i32, i32, i32, i32, i32) {
    %c0_i32 = arith.constant 0 : i32
    %c0_i32_0 = arith.constant 0 : i32
    %c0_i32_1 = arith.constant 0 : i32
    %c0_i32_2 = arith.constant 0 : i32
    %c0_i32_3 = arith.constant 0 : i32
    %c0_i32_4 = arith.constant 0 : i32
    return %c0_i32, %c0_i32_0, %c0_i32_1, %c0_i32_2, %c0_i32_3 : i32, i32, i32, i32, i32
  }
  func.func @transform_5(%arg0: i32) -> (i32, i32, i32) {
    %c0_i32 = arith.constant 0 : i32
    %c0_i32_0 = arith.constant 0 : i32
    %c0_i32_1 = arith.constant 0 : i32
    %c0_i32_2 = arith.constant 0 : i32
    return %c0_i32, %c0_i32_0, %c0_i32_1 : i32, i32, i32
  }
  func.func @transform_6(%arg0: i32) -> (i32, i32, i32) {
    %c0_i32 = arith.constant 0 : i32
    %c0_i32_0 = arith.constant 0 : i32
    %c0_i32_1 = arith.constant 0 : i32
    %c0_i32_2 = arith.constant 0 : i32
    return %c0_i32, %c0_i32_0, %c0_i32_1 : i32, i32, i32
  }
  func.func @transform_7(%arg0: i32) -> (i32, i32, i32) {
    %c0_i32 = arith.constant 0 : i32
    %c0_i32_0 = arith.constant 0 : i32
    %c0_i32_1 = arith.constant 0 : i32
    %c0_i32_2 = arith.constant 0 : i32
    return %c0_i32, %c0_i32_0, %c0_i32_1 : i32, i32, i32
  }
  func.func @transform_8(%arg0: i32) -> (i32, i32) {
    %c0_i32 = arith.constant 0 : i32
    %c0_i32_0 = arith.constant 0 : i32
    %c0_i32_1 = arith.constant 0 : i32
    return %c0_i32, %c0_i32_0 : i32, i32
  }
  func.func @transform_9(%arg0: i32) -> (i32, i32, i32) {
    %c0_i32 = arith.constant 0 : i32
    %c0_i32_0 = arith.constant 0 : i32
    %c0_i32_1 = arith.constant 0 : i32
    return %arg0, %c0_i32, %c0_i32_0 : i32, i32, i32
  }
  func.func @transform_10(%arg0: i32) -> (i32, i32, i32) {
    %c0_i32 = arith.constant 0 : i32
    %c0_i32_0 = arith.constant 0 : i32
    %c0_i32_1 = arith.constant 0 : i32
    return %arg0, %c0_i32, %c0_i32_0 : i32, i32, i32
  }
}

</mosaic_0001>

<bundles_post_ra>
// kernel: _lambda_.1
= control target key start
LH: loop header
LB: loop body
LE: loop exit
PB: predicated region body
PF: predicated region fallthrough
CT: control target
= control target key end

     0   :  { %16 = vsyncpa [#allocation3], 0  ;;  %s6809_s0 = inlined_call_operand.vmem [shape: bf16[2,8,256], index: 0, kind: input, shape index: {}]   ;;  %s6810_s1 = inlined_call_operand.vmem [shape: f32[8,32], index: 1, kind: input, shape index: {}]   ;;  %s6811_s2 = inlined_call_operand.vmem [shape: bf16[256,32], index: 2, kind: input, shape index: {}]   ;;  %s6812_s3 = inlined_call_operand.vmem [shape: bf16[2,4,4,32,8], index: 3, kind: input, shape index: {}]   ;;  %s6813_s4 = inlined_call_operand.vmem [shape: f32[2,3,4,1,8], index: 4, kind: input, shape index: {}]   ;;  %s6814_s5 = inlined_call_operand.vmem [shape: bf16[2,32,128], index: 5, kind: input, shape index: {}]   ;;  %s6815_s6 = inlined_call_operand.vmem [shape: bf16[2,128,32], index: 6, kind: input, shape index: {}]   ;;  %s6816_s7 = inlined_call_operand.vmem [shape: f32[2,7,128], index: 7, kind: input, shape index: {}]   ;;  %s6817_s8 = inlined_call_operand.vmem [shape: f32[37,128], index: 8, kind: input, shape index: {}]   ;;  %s6818_s9 = inlined_call_operand.hbm [shape: f32[2,1,128], index: 9, kind: output, shape index: {0}]   ;;  %s6819_s10 = inlined_call_operand.hbm [shape: f32[2,1,32], index: 10, kind: output, shape index: {1}]  }
   0x1   :  { %18 = vsyncpa [#allocation3 + $0x1], 0 }
   0x2   :  { %19 = vsyncpa [#allocation5], 0 }
   0x3   :  { %21 = vsyncpa [#allocation5 + $0x1], 0  ;;  %s5835_s13 = smov 0   ;;  %s5837_s14 = smov 0  }
   0x4   :  { %s5839_s15 = smov 0   ;;  %s5841_s16 = smov 0  }
   0x5 LB: > { %6821 = sst [smem:[#allocation8_spill]] %s5769_s15  ;;  %s5856_s17 = sadd.s32 4294967295, %s5773_s16   ;;  %s5773_s16 = sphi %s5841_s16, %s6829_s16   ;;  %s5769_s15 = sphi %s5839_s15, %s6826_s15   ;;  %s5765_s14 = sphi %s5837_s14, %s6828_s14   ;;  %s5761_s13 = sphi %s5835_s13, %s6827_s13  }
   0x6   : > { %s4601_s18 = sadd.s32 4294967294, %s5773_s16   ;;  %s5860_s19 = sadd.s32 1, %s5773_s16  }
   0x7   : > { %s228_s20 = sadd.s32 1, %s5769_s15  ;;  %s225_s21 = ssub.s32 %s5773_s16, %s5860_s19 }
   0x8   : > { %p238_p0 = scmp.ne.s32.totalorder %s5769_s15, %s5765_s14  ;;  %p226_p1 = scmp.eq.s32.totalorder %s225_s21, 0 }
   0x9   : > { %p239_p2 = scmp.eq.s32.totalorder %s5856_s17, 1  ;;  %p244_p3 = scmp.ne.s32.totalorder %s5765_s14, %s5761_s13 }
   0xa   : > { %p245_p4 = scmp.eq.s32.totalorder %s4601_s18, 1  ;;  %p4604_p7 = scmp.ge.s32.totalorder %s5773_s16, 1 }
   0xb   : > { %s5871_s22 = scalar_select %p226_p1, %s5769_s15, %s228_s20  }
   0xc   : > { %p5873_p5 = por %p239_p2, %p238_p0  ;;  %p5877_p6 = por %p245_p4, %p244_p3 }
   0xd   : > { %6822 = sst [smem:[#allocation9_spill]] %s5871_s22  ;;  %p321_p8 = scmp.lt.s32.totalorder %s5773_s16, 3 }
   0xf   : > { %p322_p9 = pnand %p4604_p7, %p321_p8 }
  0x10   : > { %v5529_v0 = vld [vmem:[%s6811_s2 + $0x40] sm:$0xff] (!%p322_p9)   ;;  %v5531_v2 = vld [vmem:[%s6811_s2 + $0x48] sm:$0xff] (!%p322_p9)   ;;  %p362_p10 = scmp.lt.s32.totalorder (!%p322_p9), %s5856_s17, 1  ;;  %v5533_v4 = vld [vmem:[%s6811_s2 + $0x50] sm:$0xff] (!%p322_p9)   ;;  %vm622_vm0 = vcmask (!%p322_p9), 261120   ;;  %v5775_v34 = vmov (!%p322_p9), 0.0   ;;  %v637_v39 = vlaneseq (!%p322_p9) }
  0x11   : > { %325 = sbr.rel (%p322_p9) target bundleno = 5748 (0x1674), region = 56  ;;  %v5530_v1 = vld [vmem:[%s6811_s2] sm:$0xff] (!%p322_p9)   ;;  %4894 = vmatprep.subr.bf16.mxu0 (!%p322_p9), %v5529_v0  ;;  %v5532_v3 = vld [vmem:[%s6811_s2 + $0x8] sm:$0xff] (!%p322_p9)   ;;  %v5534_v5 = vld [vmem:[%s6811_s2 + $0x10] sm:$0xff] (!%p322_p9)   ;;  %5081 = vmatprep.subr.bf16.mxu1 (!%p322_p9), %v5775_v34  ;;  %vm5776_vm1 = vmmov (!%p322_p9), 0   ;;  %vm1347_vm2 = vcmask (!%p322_p9), 64512  }
  0x12   : > { %4895 = vmatpush3.bf16.msra.mxu0 (!%p322_p9), %v5530_v1  ;;  %v5535_v6 = vld [vmem:[%s6811_s2 + $0x58] sm:$0xff] (!%p322_p9)   ;;  %v5537_v8 = vld [vmem:[%s6811_s2 + $0x60] sm:$0xff] (!%p322_p9)   ;;  %v5539_v10 = vld [vmem:[%s6811_s2 + $0x68] sm:$0xff] (!%p322_p9)   ;;  %5085 = vmatprep.mubr.msk.bf16.mxu1 (!%p322_p9), %vm5776_vm1, %v5775_v34  ;;  %v5967_v41 = vshrl.u32 (!%p322_p9), %v637_v39, 7  ;;  %vm4392_vm3 = vcmask (!%p322_p9), 253952   ;;  %s4889_s26 = sshll.u32 (!%p322_p9), %s5856_s17, 4 }
  0x13   : > { %4896 = vmatprep.subr.bf16.mxu0 (!%p322_p9), %v5531_v2  ;;  %v5536_v7 = vld [vmem:[%s6811_s2 + $0x18] sm:$0xff] (!%p322_p9)   ;;  %v5538_v9 = vld [vmem:[%s6811_s2 + $0x20] sm:$0xff] (!%p322_p9)   ;;  %v5540_v12 = vld [vmem:[%s6811_s2 + $0x28] sm:$0xff] (!%p322_p9)   ;;  %s6737_s11 = scalar_lea.hbm (!%p322_p9), %s6819_s10, %s4889_s26 }
  0x14   : > { %v5541_v14 = vld [vmem:[%s6811_s2 + $0x70] sm:$0xff] (!%p322_p9)   ;;  %v5543_v16 = vld [vmem:[%s6811_s2 + $0x78] sm:$0xff] (!%p322_p9)   ;;  %v401_v20 = vld [vmem:[%s6810_s1] sm:$0xff] (!%p322_p9)  ;;  %v639_v42 = vsub.s32 (!%p322_p9), 0, %v5967_v41  ;;  %v5976_v44 = vsub.s32 (!%p322_p9), 1, %v5967_v41 }
  0x15   : > { %v5542_v15 = vld [vmem:[%s6811_s2 + $0x30] sm:$0xff] (!%p322_p9)   ;;  %v5544_v17 = vld [vmem:[%s6811_s2 + $0x38] sm:$0xff] (!%p322_p9)   ;;  %v5547_v32 = vld [vmem:[%s6812_s3] sm:$0xff] (!%p322_p9)  }
  0x16   : > { %4897 = vmatpush3.bf16.msra.mxu0 (!%p322_p9), %v5532_v3  ;;  %v5548_v33 = vld [vmem:[%s6812_s3 + $0x10] sm:$0xff] (!%p322_p9)   ;;  %v5549_v35 = vld [vmem:[%s6812_s3 + $0x8] sm:$0xff] (!%p322_p9)   ;;  %v5550_v36 = vld [vmem:[%s6812_s3 + $0x18] sm:$0xff] (!%p322_p9)  }
  0x17   : > { %4898 = vmatprep.subr.bf16.mxu0 (!%p322_p9), %v5533_v4  ;;  %5082 = vmatpush3.bf16.msra.mxu1 (!%p322_p9), %v5548_v33  ;;  %v5973_v43 = vld [vmem:[%s6816_s7] sm:$0x7f] (!%p322_p9)  ;;  %v5553_v54 = vld [vmem:[%s6812_s3 + $0x28] sm:$0xff] (!%p322_p9)   ;;  %v5555_v56 = vld [vmem:[%s6812_s3 + $0x30] sm:$0xff] (!%p322_p9)  }
  0x18   : > { %s363_s21 = scalar_select %p362_p10, %s5856_s17, 1  ;;  %5083 = vmatprep.subr.bf16.mxu1 %v5775_v34  ;;  %v640_v45 = vrot.slane %v5973_v43, %v639_v42  ;;  %v645_v47 = vrot.slane %v5973_v43, %v5976_v44  ;;  %v5551_v51 = vld [vmem:[%s6812_s3 + $0x20] sm:$0xff]   ;;  %v5554_v55 = vld [vmem:[%s6812_s3 + $0x48] sm:$0xff]   ;;  %v5557_v58 = vld [vmem:[%s6812_s3 + $0x38] sm:$0xff]  }
  0x19   : > { %v5552_v52 = vld [vmem:[%s6812_s3 + $0x40] sm:$0xff]   ;;  %v5558_v59 = vld [vmem:[%s6812_s3 + $0x68] sm:$0xff]   ;;  %v5559_v60 = vld [vmem:[%s6812_s3 + $0x50] sm:$0xff]  }
  0x1a   : > { %s4893_s29 = sshll.u32 %s363_s21, 3  ;;  %4899 = vmatpush3.bf16.msra.mxu0 %v5534_v5  ;;  %v5556_v57 = vld [vmem:[%s6812_s3 + $0x60] sm:$0xff]   ;;  %v5561_v62 = vld [vmem:[%s6812_s3 + $0x58] sm:$0xff]   ;;  %v5562_v63 = vld [vmem:[%s6812_s3 + $0x88] sm:$0xff]   ;;  %s6696_s21 = sand.u32 1, %s5765_s14  }
  0x1b   : > { %4900 = vmatprep.subr.bf16.mxu0 %v5535_v6  ;;  %s366_s25 = scalar_lea.vmem %s6809_s0, %s4893_s29  ;;  %5084 = vmatpush3.bf16.msra.mxu1 %v5550_v36  ;;  %v5560_v61 = vld [vmem:[%s6812_s3 + $0x80] sm:$0xff]   ;;  %v5563_v0 = vld [vmem:[%s6812_s3 + $0x70] sm:$0xff]   ;;  %v5565_v2 = vld [vmem:[%s6812_s3 + $0x78] sm:$0xff]   ;;  %s361_s27 = scalar_lea.vmem [#allocation4], %s6696_s21 }
  0x1c   : > { %v368_v11 = vld [vmem:[%s366_s25] sm:$0xff]  ;;  %5089 = vmatprep.subr.bf16.mxu1 %v5775_v34  ;;  %v5566_v3 = vld [vmem:[%s6812_s3 + $0xa8] sm:$0xff]   ;;  %v5567_v4 = vld [vmem:[%s6812_s3 + $0x90] sm:$0xff]   ;;  %s4518_s12 = sshll.u32 %s361_s27, 4  ;;  %s4493_s15 = scalar_lea.sflag [#allocation5], %s6696_s21  ;;  %s4519_s12 = int_to_ptr.vmem [resolvable:$true] %s4518_s12 }
  0x1d   : > { %v4608_v13 = vcombine.high %v368_v11, %v368_v11  ;;  %v4607_v18 = vcombine.low %v368_v11, %v368_v11  ;;  %v5564_v1 = vld [vmem:[%s6812_s3 + $0xa0] sm:$0xff]   ;;  %v5568_v5 = vld [vmem:[%s6812_s3 + $0x98] sm:$0xff]   ;;  %v5569_v6 = vld [vmem:[%s6812_s3 + $0xb0] sm:$0xff]   ;;  %s5679_s22 = scalar_lea.vmem %s4519_s12, 16  ;;  %s5778_s29 = smov [#allocation4]  }
  0x1e   : > { %4901 = vmatpush3.bf16.msra.mxu0 %v5536_v7  ;;  %v5570_v7 = vld [vmem:[%s6812_s3 + $0xb8] sm:$0xff]   ;;  %p5680_p11 = scmp.ne.s32.totalorder %s4519_s12, %s5679_s22  ;;  %s5683_s18 = sshll.u32 %s5778_s29, 4  ;;  %s5684_s18 = int_to_ptr.vmem [resolvable:$false] %s5683_s18 }
  0x1f   : > { %4902 = vmatprep.subr.bf16.mxu0 %v5537_v8  ;;  %537 = vmatprep.mubr.bf16.mxu0 %v4608_v13  ;;  %s5685_s20 = scalar_lea.vmem %s5684_s18, 32  ;;  %p5686_p0 = scmp.lt.s32.totalorder %s4519_s12, %s5684_s18 }
  0x20   : > { %p5681_p12 = pnand %p5680_p11, %p5873_p5  ;;  %p5687_p1 = scmp.lt.s32.totalorder %s5685_s20, %s5679_s22 }
  0x22   : > { %4903 = vmatpush3.bf16.msra.mxu0 %v5538_v9  ;;  %p5682_p13 = pneg %p5681_p12  ;;  %p5688_p2 = por %p5687_p1, %p5686_p0 }
  0x23   : > { %4904 = vmatprep.subr.bf16.mxu0 %v5539_v10 }
  0x24   : > { %p5689_p3 = pnand %p5688_p2, %p5682_p13 }
  0x26   : > { %4905 = vmatpush3.bf16.msra.mxu0 %v5540_v12 }
  0x27   : > { %4906 = vmatprep.subr.bf16.mxu0 %v5541_v14 }
  0x2a   : > { %4907 = vmatpush3.bf16.msra.mxu0 %v5542_v15 }
  0x2b   : > { %4908 = vmatprep.subr.bf16.mxu0 %v5543_v16  ;;  %v4641_v16 = vld [vmem:[%s6813_s4 + $0x4] ss:$0 sm:$0xff] }
  0x2e   : > { %4909 = vmatpush3.bf16.msra.mxu0 %v5544_v17 }
  0x2f   : > { %5073 = vmatprep.subr.bf16.mxu0 %v5775_v34 }
  0x31   : > { %538 = vmatmul.mubr.bf16.vlgmr.msra.gmra.mrb[0].mxu0 %v4607_v18 }
  0x32   : > { %5074 = vmatpush3.bf16.msra.mxu0 %v5547_v32  ;;  %5077 = vmatprep.mubr.msk.bf16.mxu0 %vm5776_vm1, %v5775_v34  ;;  %v4627_v32 = vld [vmem:[%s6813_s4 + $0x2] ss:$0 sm:$0xff] }
  0x33   : > { %5075 = vmatprep.subr.bf16.mxu0 %v5775_v34 }
  0x36   : > { %5076 = vmatpush3.bf16.msra.mxu0 %v5549_v35 }
  0x37   : > { %5105 = vmatprep.subr.bf16.mxu0 %v5775_v34 }
 0x104   : > { %v4910_v19 = vpop.f32.mrb[0].mxu0 }
 0x105   : > { %v4911_v21 = vpop.f32.mrb[1].mxu0 }
 0x106   : > { %v4912_v22 = vadd.f32 %v4911_v21, %v4910_v19  ;;  %v4913_v23 = vpop.f32.mrb[2].mxu0  ;;  %v4625_v19 = vld [vmem:[%s6813_s4] ss:$0 sm:$0xff] }
 0x107   : > { %v4914_v24 = vpop.f32.mrb[3].mxu0 }
 0x108   : > { %v5939_v25 = vadd.f32 %v4912_v22, %v401_v20 }
 0x10a   : > { %v623_v26 = vsel %vm622_vm0, %v5939_v25, 0.0 }
 0x10b   : > { %624 = vadd.xlane.f32.xlu0 %v623_v26 }
 0x198   : > { %v625_v27 = vpop.xlane.xlu0 %624 }
 0x199   : > { %v627_v28 = vmul.f32 0.03125, %v625_v27 }
 0x19b   : > { %v628_v29 = vsub.f32 %v5939_v25, %v627_v28 }
 0x19d   : > { %v629_v30 = vmul.f32 %v628_v29, %v628_v29 }
 0x19f   : > { %v630_v31 = vsel %vm622_vm0, %v629_v30, 0.0 }
 0x1a0   : > { %631 = vadd.xlane.f32.xlu0 %v630_v31 }
 0x22d   : > { %v632_v37 = vpop.xlane.xlu0 %631 }
 0x22e   : > { %v633_v38 = vmul.f32 0.03125, %v632_v37 }
 0x230   : > { %v634_v40 = vadd.f32 1e-12, %v633_v38 }
 0x232   : > { %5631 = vrsqrt.f32 %v634_v40 }
 0x23c   : > { %v5632_v46 = vpop.eup %5631 }
 0x23d   : > { %v636_v48 = vmul.f32 %v5632_v46, %v628_v29  ;;  %v4643_v29 = vld [vmem:[%s6813_s4 + $0x6] ss:$0 sm:$0xff]  ;;  %v4642_v46 = vld [vmem:[%s6813_s4 + $0x5] ss:$0 sm:$0xff] }
 0x23f   : > { %v641_v49 = vmul.f32 %v640_v45, %v636_v48 }
 0x241   : > { %v646_v50 = vadd.f32 %v645_v47, %v641_v49  ;;  %v4657_v47 = vld [vmem:[%s6813_s4 + $0x8] ss:$0 sm:$0xff] }
 0x243   : > { %v5989_v53 = vpack.c.bf16 %v646_v50, %v646_v50  ;;  %v4626_v50 = vld [vmem:[%s6813_s4 + $0x1] ss:$0 sm:$0xff] }
 0x245   : > { %5078 = vmatmul.mubr.msk.bf16.vlgmr.msra.gmra.mrb[4].mxu0 %vm622_vm0, %v5989_v53  ;;  %5086 = vmatmul.mubr.msk.bf16.vlgmr.msra.gmra.mrb[0].mxu1 %vm622_vm0, %v5989_v53 }
 0x246   : > { %5090 = vmatpush3.bf16.msra.mxu1 %v5551_v51  ;;  %5106 = vmatpush3.bf16.msra.mxu0 %v5552_v52 }
 0x247   : > { %5091 = vmatprep.subr.bf16.mxu1 %v5775_v34  ;;  %5107 = vmatprep.subr.bf16.mxu0 %v5775_v34 }
 0x248   : > { %5093 = vmatprep.mubr.msk.bf16.mxu1 %vm5776_vm1, %v5775_v34  ;;  %5109 = vmatprep.mubr.msk.bf16.mxu0 %vm5776_vm1, %v5775_v34 }
 0x24a   : > { %5092 = vmatpush3.bf16.msra.mxu1 %v5553_v54  ;;  %5108 = vmatpush3.bf16.msra.mxu0 %v5554_v55 }
 0x24b   : > { %5097 = vmatprep.subr.bf16.mxu1 %v5775_v34  ;;  %5121 = vmatprep.subr.bf16.mxu0 %v5775_v34 }
 0x24d   : > { %5094 = vmatmul.mubr.msk.bf16.vlgmr.msra.gmra.mrb[4].mxu1 %vm622_vm0, %v5989_v53  ;;  %5110 = vmatmul.mubr.msk.bf16.vlgmr.msra.gmra.mrb[8].mxu0 %vm622_vm0, %v5989_v53 }
 0x24e   : > { %5098 = vmatpush3.bf16.msra.mxu1 %v5555_v56  ;;  %5122 = vmatpush3.bf16.msra.mxu0 %v5556_v57 }
 0x24f   : > { %5099 = vmatprep.subr.bf16.mxu1 %v5775_v34  ;;  %5123 = vmatprep.subr.bf16.mxu0 %v5775_v34 }
 0x250   : > { %5101 = vmatprep.mubr.msk.bf16.mxu1 %vm5776_vm1, %v5775_v34  ;;  %5125 = vmatprep.mubr.msk.bf16.mxu0 %vm5776_vm1, %v5775_v34 }
 0x252   : > { %5100 = vmatpush3.bf16.msra.mxu1 %v5557_v58  ;;  %5124 = vmatpush3.bf16.msra.mxu0 %v5558_v59 }
 0x253   : > { %5113 = vmatprep.subr.bf16.mxu1 %v5775_v34  ;;  %5137 = vmatprep.subr.bf16.mxu0 %v5775_v34 }
 0x255   : > { %5102 = vmatmul.mubr.msk.bf16.vlgmr.msra.gmra.mrb[8].mxu1 %vm622_vm0, %v5989_v53  ;;  %5126 = vmatmul.mubr.msk.bf16.vlgmr.msra.gmra.mrb[12].mxu0 %vm622_vm0, %v5989_v53 }
 0x256   : > { %5114 = vmatpush3.bf16.msra.mxu1 %v5559_v60  ;;  %5138 = vmatpush3.bf16.msra.mxu0 %v5560_v61  ;;  %v4644_v60 = vld [vmem:[%s6813_s4 + $0x7] ss:$0 sm:$0xff] }
 0x257   : > { %5115 = vmatprep.subr.bf16.mxu1 %v5775_v34  ;;  %5139 = vmatprep.subr.bf16.mxu0 %v5775_v34 }
 0x258   : > { %5117 = vmatprep.mubr.msk.bf16.mxu1 %vm5776_vm1, %v5775_v34  ;;  %5141 = vmatprep.mubr.msk.bf16.mxu0 %vm5776_vm1, %v5775_v34 }
 0x25a   : > { %5116 = vmatpush3.bf16.msra.mxu1 %v5561_v62  ;;  %5140 = vmatpush3.bf16.msra.mxu0 %v5562_v63  ;;  %v4628_v63 = vld [vmem:[%s6813_s4 + $0x3] ss:$0 sm:$0xff] }
 0x25b   : > { %5129 = vmatprep.subr.bf16.mxu1 %v5775_v34  ;;  %5153 = vmatprep.subr.bf16.mxu0 %v5775_v34 }
 0x25d   : > { %5118 = vmatmul.mubr.msk.bf16.vlgmr.msra.gmra.mrb[12].mxu1 %vm622_vm0, %v5989_v53  ;;  %5142 = vmatmul.mubr.msk.bf16.vlgmr.msra.gmra.mrb[16].mxu0 %vm622_vm0, %v5989_v53 }
 0x25e   : > { %5130 = vmatpush3.bf16.msra.mxu1 %v5563_v0  ;;  %5154 = vmatpush3.bf16.msra.mxu0 %v5564_v1 }
 0x25f   : > { %5131 = vmatprep.subr.bf16.mxu1 %v5775_v34  ;;  %5155 = vmatprep.subr.bf16.mxu0 %v5775_v34 }
 0x260   : > { %5133 = vmatprep.mubr.msk.bf16.mxu1 %vm5776_vm1, %v5775_v34  ;;  %5157 = vmatprep.mubr.msk.bf16.mxu0 %vm5776_vm1, %v5775_v34 }
 0x262   : > { %5132 = vmatpush3.bf16.msra.mxu1 %v5565_v2  ;;  %5156 = vmatpush3.bf16.msra.mxu0 %v5566_v3 }
 0x263   : > { %5145 = vmatprep.subr.bf16.mxu1 %v5775_v34  ;;  %5169 = vmatprep.subr.mxu0 %v5775_v34 }
 0x265   : > { %5134 = vmatmul.mubr.msk.bf16.vlgmr.msra.gmra.mrb[16].mxu1 %vm622_vm0, %v5989_v53  ;;  %5158 = vmatmul.mubr.msk.bf16.vlgmr.msra.gmra.mrb[20].mxu0 %vm622_vm0, %v5989_v53 }
 0x266   : > { %5146 = vmatpush3.bf16.msra.mxu1 %v5567_v4  ;;  %5149 = vmatprep.mubr.msk.bf16.mxu1 %vm5776_vm1, %v5775_v34 }
 0x267   : > { %5147 = vmatprep.subr.bf16.mxu1 %v5775_v34  ;;  %5171 = vmatprep.mubr.msk.f32.mxu0 %vm5776_vm1, %v5775_v34 }
 0x26a   : > { %5148 = vmatpush3.bf16.msra.mxu1 %v5568_v5 }
 0x26b   : > { %5161 = vmatprep.subr.bf16.mxu1 %v5775_v34 }
 0x26d   : > { %5150 = vmatmul.mubr.msk.bf16.vlgmr.msra.gmra.mrb[20].mxu1 %vm622_vm0, %v5989_v53 }
 0x26e   : > { %5162 = vmatpush3.bf16.msra.mxu1 %v5569_v6  ;;  %5165 = vmatprep.mubr.msk.bf16.mxu1 %vm5776_vm1, %v5775_v34 }
 0x26f   : > { %5163 = vmatprep.subr.bf16.mxu1 %v5775_v34 }
 0x272   : > { %5164 = vmatpush3.bf16.msra.mxu1 %v5570_v7 }
 0x273   : > { %5174 = vmatprep.subr.mxu1 %v5775_v34 }
 0x275   : > { %5166 = vmatmul.mubr.msk.bf16.vlgmr.msra.gmra.mrb[24].mxu1 %vm622_vm0, %v5989_v53 }
 0x276   : > { %5176 = vmatprep.mubr.msk.f32.mxu1 %vm5776_vm1, %v5775_v34 }
 0x318   : > { %v721_v8 = vpop.f32.mrb[4].mxu0  ;;  %v773_v9 = vpop.f32.mrb[0].mxu1 }
 0x319   : > { %v5079_v10 = vpop.f32.mrb[5].mxu0  ;;  %v5087_v11 = vpop.f32.mrb[1].mxu1  ;;  %v722_v28 = vadd.f32 %v4625_v19, %v721_v8  ;;  %v774_v59 = vadd.f32 %v4626_v50, %v773_v9  ;;  %v4658_v8 = vld [vmem:[%s6813_s4 + $0x9] ss:$0 sm:$0xff] }
 0x31a   : > { %v724_v12 = vpop.f32.mrb[6].mxu0  ;;  %v776_v13 = vpop.f32.mrb[2].mxu1 }
 0x31b   : > { %v5080_v14 = vpop.f32.mrb[7].mxu0  ;;  %v5088_v15 = vpop.f32.mrb[3].mxu1 }
 0x320   : > { %v825_v17 = vpop.f32.mrb[4].mxu1  ;;  %v953_v18 = vpop.f32.mrb[8].mxu0 }
 0x321   : > { %v954_v20 = vadd.f32 %v4641_v16, %v953_v18  ;;  %v5095_v21 = vpop.f32.mrb[5].mxu1  ;;  %v5111_v22 = vpop.f32.mrb[9].mxu0  ;;  %v826_v45 = vadd.f32 %v4627_v32, %v825_v17 }
 0x322   : > { %v828_v23 = vpop.f32.mrb[6].mxu1  ;;  %v956_v24 = vpop.f32.mrb[10].mxu0 }
 0x323   : > { %v5096_v26 = vpop.f32.mrb[7].mxu1  ;;  %v5112_v27 = vpop.f32.mrb[11].mxu0  ;;  %5170 = vmatpush3.xpose.msk.msra.mxu0 %vm1347_vm2, %v954_v20 }
 0x324   : > { %5179 = vmatprep.subr.mxu0 %v5775_v34 }
 0x326   : > { %5172 = vmatmul.mubr.msk.f32.vlgmr.msra.gmra.mrb[24].mxu0 %vm1347_vm2, %v722_v28 }
 0x327   : > { %5181 = vmatprep.mubr.msk.f32.mxu0 %vm5776_vm1, %v5775_v34 }
 0x328   : > { %v877_v30 = vpop.f32.mrb[8].mxu1  ;;  %v1057_v31 = vpop.f32.mrb[12].mxu0 }
 0x329   : > { %v1058_v33 = vadd.f32 %v4643_v29, %v1057_v31  ;;  %v5103_v35 = vpop.f32.mrb[9].mxu1  ;;  %v5127_v36 = vpop.f32.mrb[13].mxu0  ;;  %v878_v7 = vadd.f32 %v4628_v63, %v877_v30  ;;  %v4659_v63 = vld [vmem:[%s6813_s4 + $0xa] ss:$0 sm:$0xff] }
 0x32a   : > { %v880_v37 = vpop.f32.mrb[10].mxu1  ;;  %v1060_v38 = vpop.f32.mrb[14].mxu0 }
 0x32b   : > { %v5104_v39 = vpop.f32.mrb[11].mxu1  ;;  %v5128_v40 = vpop.f32.mrb[15].mxu0  ;;  %5180 = vmatpush3.xpose.msk.msra.mxu0 %vm1347_vm2, %v1058_v33 }
 0x32c   : > { %5189 = vmatprep.subr.mxu0 %v5775_v34 }
 0x32e   : > { %5182 = vmatmul.mubr.msk.f32.vlgmr.msra.gmra.mrb[26].mxu0 %vm1347_vm2, %v826_v45 }
 0x32f   : > { %5191 = vmatprep.mubr.msk.f32.mxu0 %vm5776_vm1, %v5775_v34 }
 0x330   : > { %v1005_v48 = vpop.f32.mrb[12].mxu1  ;;  %v1185_v49 = vpop.f32.mrb[16].mxu0 }
 0x331   : > { %v1006_v51 = vadd.f32 %v4642_v46, %v1005_v48  ;;  %v1186_v52 = vadd.f32 %v4657_v47, %v1185_v49  ;;  %v5119_v53 = vpop.f32.mrb[13].mxu1  ;;  %v5143_v54 = vpop.f32.mrb[17].mxu0 }
 0x332   : > { %v1008_v55 = vpop.f32.mrb[14].mxu1  ;;  %v1188_v56 = vpop.f32.mrb[18].mxu0 }
 0x333   : > { %v5120_v57 = vpop.f32.mrb[15].mxu1  ;;  %v5144_v58 = vpop.f32.mrb[19].mxu0  ;;  %5175 = vmatpush3.xpose.msk.msra.mxu1 %vm1347_vm2, %v1006_v51  ;;  %5190 = vmatpush3.msra.mxu0 %v1186_v52 }
 0x334   : > { %5184 = vmatprep.subr.mxu1 %v5775_v34  ;;  %5199 = vmatprep.subr.mxu0 %v5775_v34 }
 0x336   : > { %5177 = vmatmul.mubr.msk.f32.vlgmr.msra.gmra.mrb[28].mxu1 %vm1347_vm2, %v774_v59 }
 0x337   : > { %5186 = vmatprep.mubr.msk.f32.mxu1 %vm5776_vm1, %v5775_v34 }
 0x338   : > { %v1109_v61 = vpop.f32.mrb[16].mxu1  ;;  %v6153_v62 = vpop.f32.mrb[20].mxu0 }
 0x339   : > { %v1110_v0 = vadd.f32 %v4644_v60, %v1109_v61  ;;  %v5135_v1 = vpop.f32.mrb[17].mxu1  ;;  %v5159_v2 = vpop.f32.mrb[21].mxu0 }
 0x33a   : > { %v1112_v3 = vpop.f32.mrb[18].mxu1  ;;  %v1292_v4 = vpop.f32.mrb[22].mxu0  ;;  %v1290_v2 = vadd.f32 %v4659_v63, %v6153_v62 }
 0x33b   : > { %v5136_v5 = vpop.f32.mrb[19].mxu1  ;;  %v5160_v6 = vpop.f32.mrb[23].mxu0  ;;  %5185 = vmatpush3.xpose.msk.msra.mxu1 %vm1347_vm2, %v1110_v0  ;;  %v5571_v4 = vld [vmem:[%s6812_s3 + $0xc0] sm:$0xff]  }
 0x33c   : > { %5194 = vmatprep.subr.mxu1 %v5775_v34 }
 0x33e   : > { %5187 = vmatmul.mubr.msk.f32.vlgmr.msra.gmra.mrb[30].mxu1 %vm1347_vm2, %v878_v7  ;;  %v2010_v7 = vsel %vm1347_vm2, %v5571_v4, 0 }
 0x33f   : > { %5196 = vmatprep.mubr.msk.f32.mxu1 %vm5776_vm1, %v5775_v34 }
 0x340   : > { %v1237_v9 = vpop.f32.mrb[20].mxu1 }
 0x341   : > { %v1238_v10 = vadd.f32 %v4658_v8, %v1237_v9  ;;  %v5151_v11 = vpop.f32.mrb[21].mxu1  ;;  %v5572_v8 = vld [vmem:[%s6812_s3 + $0xc8] sm:$0xff]  }
 0x342   : > { %v1240_v12 = vpop.f32.mrb[22].mxu1  ;;  %v4660_v9 = vld [vmem:[%s6813_s4 + $0xb] ss:$0 sm:$0xff] }
 0x343   : > { %v5152_v13 = vpop.f32.mrb[23].mxu1  ;;  %5195 = vmatpush3.msra.mxu1 %v1238_v10 }
 0x344   : > { %5204 = vmatprep.subr.mxu1 %v5775_v34  ;;  %v2013_v13 = vsel %vm1347_vm2, %v5572_v8, 0 }
 0x348   : > { %v6167_v14 = vpop.f32.mrb[24].mxu1 }
 0x349   : > { %v5167_v15 = vpop.f32.mrb[25].mxu1  ;;  %v1342_v12 = vadd.f32 %v4660_v9, %v6167_v14  ;;  %v5573_v14 = vld [vmem:[%s6812_s3 + $0xd0] sm:$0xff]  }
 0x34a   : > { %v1344_v16 = vpop.f32.mrb[26].mxu1 }
 0x34b   : > { %v5168_v17 = vpop.f32.mrb[27].mxu1 }
 0x34c   : > { %v2069_v17 = vsel %vm1347_vm2, %v5573_v14, 0 }
 0x3f9   : > { %v1420_v18 = vpop.f32.mrb[24].mxu0 }
 0x3fa   : > { %v1652_v19 = vmul.f32 0.35355338, %v1420_v18  ;;  %v5173_v20 = vpop.f32.mrb[25].mxu0  ;;  %v5575_v18 = vld [vmem:[%s6812_s3 + $0xd8] sm:$0xff]  }
 0x3fb   : > { %v5574_v20 = vld [vmem:[%s6812_s3 + $0xe0] sm:$0xff]  }
 0x3fc   : > { %v1656_v21 = vsel %vm1347_vm2, %v1652_v19, -inf }
 0x3fd   : > { %1657 = vmax.xlane.f32.xlu1 %v1656_v21 }
 0x401   : > { %v1572_v22 = vpop.f32.mrb[26].mxu0 }
 0x402   : > { %v1654_v23 = vmul.f32 0.35355338, %v1572_v22  ;;  %v5183_v24 = vpop.f32.mrb[27].mxu0 }
 0x403   : > { %v2128_v24 = vsel %vm1347_vm2, %v5574_v20, 0  ;;  %v2265_v20 = vsub.s32 3, %v5967_v41 }
 0x404   : > { %v1662_v26 = vsel %vm1347_vm2, %v1654_v23, -inf }
 0x405   : > { %1663 = vmax.xlane.f32.xlu0 %v1662_v26  ;;  %v5576_v26 = vld [vmem:[%s6812_s3 + $0xe8] sm:$0xff]  }
 0x409   : > { %v1496_v27 = vpop.f32.mrb[28].mxu1 }
 0x40a   : > { %v1653_v28 = vmul.f32 0.35355338, %v1496_v27  ;;  %v5178_v29 = vpop.f32.mrb[29].mxu1 }
 0x40b   : > { %v2131_v29 = vsel %vm1347_vm2, %v5576_v26, 0 }
 0x40c   : > { %v1659_v30 = vsel %vm1347_vm2, %v1653_v28, -inf }
 0x40d   : > { %1660 = vmax.xlane.f32.xlu1 %v1659_v30  ;;  %v5577_v30 = vld [vmem:[%s6812_s3 + $0xf0] sm:$0xff]  }
 0x411   : > { %v1648_v31 = vpop.f32.mrb[30].mxu1 }
 0x412   : > { %v1655_v32 = vmul.f32 0.35355338, %v1648_v31  ;;  %v5188_v33 = vpop.f32.mrb[31].mxu1 }
 0x414   : > { %v1665_v35 = vsel %vm1347_vm2, %v1655_v32, -inf }
 0x415   : > { %1666 = vmax.xlane.f32.xlu1 %v1665_v35 }
 0x48a   : > { %v1658_v36 = vpop.xlane.xlu1 %1657 }
 0x48b   : > { %v1668_v37 = vsub.f32 %v1652_v19, %v1658_v36  ;;  %v2072_v19 = vsel %vm1347_vm2, %v5575_v18, 0  ;;  %v2187_v36 = vsel %vm1347_vm2, %v5577_v30, 0  ;;  %v5582_v30 = vld [vmem:[%s6815_s6 + $0x8] sm:$0xff]  }
 0x48d   : > { %v1672_v38 = vmul.f32 1.442695, %v1668_v37  ;;  %v5578_v37 = vld [vmem:[%s6812_s3 + $0xf8] sm:$0xff]  }
 0x48f   : > { %5633 = vpow2.f32 %v1672_v38 }
 0x492   : > { %v1664_v39 = vpop.xlane.xlu0 %1663 }
 0x493   : > { %v1670_v40 = vsub.f32 %v1654_v23, %v1664_v39 }
 0x495   : > { %v1676_v45 = vmul.f32 1.442695, %v1670_v40  ;;  %v2190_v40 = vsel %vm1347_vm2, %v5578_v37, 0  ;;  %v5588_v37 = vld [vmem:[%s6815_s6 + $0x38] sm:$0xff]  }
 0x497   : > { %5635 = vpow2.f32 %v1676_v45 }
 0x499   : > { %v5634_v46 = vpop.eup %5633 }
 0x49a   : > { %v1661_v47 = vpop.xlane.xlu1 %1660  ;;  %v1680_v48 = vsel %vm1347_vm2, %v5634_v46, 0.0 }
 0x49b   : > { %v1669_v49 = vsub.f32 %v1653_v28, %v1661_v47  ;;  %1681 = vadd.xlane.f32.xlu0 %v1680_v48 }
 0x49d   : > { %v1674_v50 = vmul.f32 1.442695, %v1669_v49 }
 0x49f   : > { %5637 = vpow2.f32 %v1674_v50 }
 0x4a1   : > { %v5636_v51 = vpop.eup %5635 }
 0x4a2   : > { %v1667_v52 = vpop.xlane.xlu1 %1666  ;;  %v1686_v53 = vsel %vm1347_vm2, %v5636_v51, 0.0 }
 0x4a3   : > { %v1671_v54 = vsub.f32 %v1655_v32, %v1667_v52  ;;  %1687 = vadd.xlane.f32.xlu0 %v1686_v53 }
 0x4a5   : > { %v1678_v55 = vmul.f32 1.442695, %v1671_v54 }
 0x4a7   : > { %5639 = vpow2.f32 %v1678_v55 }
 0x4a9   : > { %v5638_v56 = vpop.eup %5637 }
 0x4aa   : > { %v1683_v57 = vsel %vm1347_vm2, %v5638_v56, 0.0 }
 0x4ab   : > { %1684 = vadd.xlane.f32.xlu1 %v1683_v57 }
 0x4b1   : > { %v5640_v58 = vpop.eup %5639 }
 0x4b2   : > { %v1689_v59 = vsel %vm1347_vm2, %v5640_v58, 0.0 }
 0x4b3   : > { %1690 = vadd.xlane.f32.xlu1 %v1689_v59 }
 0x528   : > { %v1682_v60 = vpop.xlane.xlu0 %1681 }
 0x529   : > { %5641 = vrcp.f32 %v1682_v60 }
 0x530   : > { %v1688_v61 = vpop.xlane.xlu0 %1687 }
 0x531   : > { %5643 = vrcp.f32 %v1688_v61 }
 0x533   : > { %v5642_v0 = vpop.eup %5641 }
 0x534   : > { %v1696_v1 = vmul.f32 %v5642_v0, %v5634_v46  ;;  %v2241_v0 = vsub.s32 4, %v5967_v41 }
 0x536   : > { %5192 = vmatmul.mubr.msk.f32.vlgmr.msra.gmra.mrb[28].mxu0 %vm1347_vm2, %v1696_v1 }
 0x537   : > { %5200 = vmatpush3.msra.mxu0 %v1290_v2  ;;  %5201 = vmatprep.mubr.msk.f32.mxu0 %vm5776_vm1, %v5775_v34  ;;  %v2242_v2 = vrot.slane %v5973_v43, %v2241_v0 }
 0x538   : > { %v1685_v3 = vpop.xlane.xlu1 %1684  ;;  %5209 = vmatprep.subr.bf16.mxu0 %v5775_v34 }
 0x539   : > { %5645 = vrcp.f32 %v1685_v3 }
 0x53b   : > { %v5644_v5 = vpop.eup %5643 }
 0x53c   : > { %v1698_v6 = vmul.f32 %v5644_v5, %v5636_v51 }
 0x53e   : > { %5202 = vmatmul.mubr.msk.f32.vlgmr.msra.gmra.mrb[30].mxu0 %vm1347_vm2, %v1698_v6 }
 0x53f   : > { %5210 = vmatpush3.bf16.xpose.msra.mxu0 %v2010_v7  ;;  %5213 = vmatprep.mubr.msk.bf16.mxu0 %vm5776_vm1, %v5775_v34 }
 0x540   : > { %v1691_v62 = vpop.xlane.xlu1 %1690  ;;  %5211 = vmatprep.subr.bf16.mxu0 %v5775_v34 }
 0x541   : > { %5647 = vrcp.f32 %v1691_v62 }
 0x543   : > { %v5646_v10 = vpop.eup %5645 }
 0x544   : > { %v1697_v11 = vmul.f32 %v5646_v10, %v5638_v56 }
 0x546   : > { %5197 = vmatmul.mubr.msk.f32.vlgmr.msra.gmra.mrb[32].mxu1 %vm1347_vm2, %v1697_v11 }
 0x547   : > { %5205 = vmatpush3.msra.mxu1 %v1342_v12  ;;  %5206 = vmatprep.mubr.msk.f32.mxu1 %vm5776_vm1, %v5775_v34 }
 0x548   : > { %5212 = vmatpush3.bf16.xpose.msra.mxu0 %v2013_v13  ;;  %5217 = vmatprep.subr.bf16.mxu1 %v5775_v34 }
 0x549   : > { %5225 = vmatprep.subr.bf16.mxu0 %v5775_v34 }
 0x54b   : > { %v5648_v15 = vpop.eup %5647 }
 0x54c   : > { %v1699_v16 = vmul.f32 %v5648_v15, %v5640_v58 }
 0x54e   : > { %5207 = vmatmul.mubr.msk.f32.vlgmr.msra.gmra.mrb[34].mxu1 %vm1347_vm2, %v1699_v16  ;;  %v5579_v16 = vld [vmem:[%s6814_s5] sm:$0xff]  }
 0x54f   : > { %5221 = vmatprep.mubr.msk.bf16.mxu1 %vm5776_vm1, %v5775_v34  ;;  %5218 = vmatpush3.bf16.xpose.msra.mxu1 %v2069_v17 }
 0x550   : > { %5219 = vmatprep.subr.bf16.mxu1 %v5775_v34 }
 0x557   : > { %5220 = vmatpush3.bf16.xpose.msra.mxu1 %v2072_v19  ;;  %v6275_v19 = vsub.s32 2, %v5967_v41 }
 0x558   : > { %5233 = vmatprep.subr.bf16.mxu1 %v5775_v34 }
 0x609   : > { %v1769_v21 = vpop.f32.mrb[28].mxu0 }
 0x60a   : > { %v1992_v22 = vpack.c.bf16 %v1769_v21, %v1769_v21  ;;  %v5193_v23 = vpop.f32.mrb[29].mxu0  ;;  %v2261_v21 = vrot.slane %v5973_v43, %v6275_v19 }
 0x60c   : > { %5214 = vmatmul.mubr.msk.bf16.vlgmr.msra.gmra.mrb[32].mxu0 %vm1347_vm2, %v1992_v22 }
 0x60d   : > { %5226 = vmatpush3.bf16.xpose.msra.mxu0 %v2128_v24  ;;  %5229 = vmatprep.mubr.msk.bf16.mxu0 %vm5776_vm1, %v5775_v34  ;;  %v2266_v24 = vrot.slane %v5973_v43, %v2265_v20 }
 0x60e   : > { %5227 = vmatprep.subr.bf16.mxu0 %v5775_v34 }
 0x611   : > { %v1915_v27 = vpop.f32.mrb[30].mxu0 }
 0x612   : > { %v5203_v28 = vpop.f32.mrb[31].mxu0  ;;  %v1994_v32 = vpack.c.bf16 %v1915_v27, %v1915_v27 }
 0x615   : > { %5228 = vmatpush3.bf16.xpose.msra.mxu0 %v2131_v29  ;;  %v5581_v29 = vld [vmem:[%s6815_s6] sm:$0xff]  }
 0x616   : > { %5241 = vmatprep.subr.bf16.mxu0 %v5775_v34 }
 0x619   : > { %v1842_v31 = vpop.f32.mrb[32].mxu1 }
 0x61a   : > { %v1993_v33 = vpack.c.bf16 %v1842_v31, %v1842_v31  ;;  %v5198_v35 = vpop.f32.mrb[33].mxu1  ;;  %v5583_v31 = vld [vmem:[%s6815_s6 + $0x10] sm:$0xff]  }
 0x61b   : > { %v5586_v35 = vld [vmem:[%s6815_s6 + $0x28] sm:$0xff]  }
 0x61c   : > { %5230 = vmatmul.mubr.msk.bf16.vlgmr.msra.gmra.mrb[36].mxu0 %vm1347_vm2, %v1994_v32  ;;  %5222 = vmatmul.mubr.msk.bf16.vlgmr.msra.gmra.mrb[36].mxu1 %vm1347_vm2, %v1993_v33  ;;  %v5584_v32 = vld [vmem:[%s6815_s6 + $0x18] sm:$0xff]   ;;  %v5585_v33 = vld [vmem:[%s6815_s6 + $0x20] sm:$0xff]  }
 0x61d   : > { %5234 = vmatpush3.bf16.xpose.msra.mxu1 %v2187_v36  ;;  %5237 = vmatprep.mubr.msk.bf16.mxu1 %vm5776_vm1, %v5775_v34  ;;  %v5587_v36 = vld [vmem:[%s6815_s6 + $0x30] sm:$0xff]  }
 0x61e   : > { %5235 = vmatprep.subr.bf16.mxu1 %v5775_v34  ;;  %5245 = vmatprep.mubr.msk.bf16.mxu0 %vm5776_vm1, %v5775_v34 }
 0x61f   : > { %5242 = vmatpush3.bf16.msra.mxu0 %v5579_v16 }
 0x620   : > { %5243 = vmatprep.subr.bf16.mxu0 %v5775_v34 }
 0x621   : > { %v1988_v38 = vpop.f32.mrb[34].mxu1 }
 0x622   : > { %v5208_v39 = vpop.f32.mrb[35].mxu1  ;;  %v1995_v45 = vpack.c.bf16 %v1988_v38, %v1988_v38  ;;  %v2275_v38 = vsub.s32 5, %v5967_v41 }
 0x624   : > { %v2276_v39 = vrot.slane %v5973_v43, %v2275_v38 }
 0x625   : > { %5236 = vmatpush3.bf16.xpose.msra.mxu1 %v2190_v40 }
 0x626   : > { %5249 = vmatprep.subr.bf16.mxu1 %v5775_v34 }
 0x62c   : > { %5238 = vmatmul.mubr.msk.bf16.vlgmr.msra.gmra.mrb[40].mxu1 %vm1347_vm2, %v1995_v45 }
 0x62d   : > { %5265 = vmatprep.mubr.msk.bf16.mxu1 %vm5776_vm1, %v5775_v34  ;;  %5250 = vmatpush3.bf16.msra.mxu1 %v5581_v29  ;;  %v5597_v29 = vld [vmem:[%s6812_s3 + $0x120] sm:$0xff]  }
 0x62e   : > { %5251 = vmatprep.subr.bf16.mxu1 %v5775_v34 }
 0x631   : > { %5252 = vmatpush3.bf16.msra.mxu1 %v5582_v30  ;;  %v5598_v30 = vld [vmem:[%s6812_s3 + $0x180] sm:$0xff]  }
 0x632   : > { %5253 = vmatprep.subr.bf16.mxu1 %v5775_v34 }
 0x635   : > { %5254 = vmatpush3.bf16.msra.mxu1 %v5583_v31  ;;  %v5599_v31 = vld [vmem:[%s6812_s3 + $0x128] sm:$0xff]  }
 0x636   : > { %5255 = vmatprep.subr.bf16.mxu1 %v5775_v34 }
 0x639   : > { %5256 = vmatpush3.bf16.msra.mxu1 %v5584_v32  ;;  %v5600_v32 = vld [vmem:[%s6812_s3 + $0x188] sm:$0xff]  }
 0x63a   : > { %5257 = vmatprep.subr.bf16.mxu1 %v5775_v34 }
 0x63d   : > { %5258 = vmatpush3.bf16.msra.mxu1 %v5585_v33  ;;  %v5601_v33 = vld [vmem:[%s6812_s3 + $0x130] sm:$0xff]  }
 0x63e   : > { %5259 = vmatprep.subr.bf16.mxu1 %v5775_v34 }
 0x641   : > { %5260 = vmatpush3.bf16.msra.mxu1 %v5586_v35  ;;  %v5602_v35 = vld [vmem:[%s6812_s3 + $0x1a0] sm:$0xff]  }
 0x642   : > { %5261 = vmatprep.subr.bf16.mxu1 %v5775_v34 }
 0x645   : > { %5262 = vmatpush3.bf16.msra.mxu1 %v5587_v36  ;;  %v5603_v36 = vld [vmem:[%s6812_s3 + $0x138] sm:$0xff]  }
 0x646   : > { %5263 = vmatprep.subr.bf16.mxu1 %v5775_v34 }
 0x649   : > { %5264 = vmatpush3.bf16.msra.mxu1 %v5588_v37  ;;  %v5604_v37 = vld [vmem:[%s6812_s3 + $0x1a8] sm:$0xff]  }
 0x64a   : > { %5301 = vmatprep.subr.bf16.mxu1 %v5775_v34 }
 0x6df   : > { %v2049_v46 = vpop.f32.mrb[32].mxu0 }
 0x6e0   : > { %v5215_v47 = vpop.f32.mrb[33].mxu0  ;;  %v2232_v52 = vsel %vm622_vm0, %v2049_v46, 0.0 }
 0x6e1   : > { %v2052_v48 = vpop.f32.mrb[34].mxu0 }
 0x6e2   : > { %v5216_v49 = vpop.f32.mrb[35].mxu0 }
 0x6ef   : > { %v2167_v50 = vpop.f32.mrb[36].mxu0  ;;  %v2108_v51 = vpop.f32.mrb[36].mxu1 }
 0x6f0   : > { %v2233_v53 = vsel %vm622_vm0, %v2108_v51, 0.0  ;;  %v5231_v54 = vpop.f32.mrb[37].mxu0  ;;  %v5223_v55 = vpop.f32.mrb[37].mxu1  ;;  %v2235_v59 = vsel %vm622_vm0, %v2167_v50, 0.0 }
 0x6f1   : > { %v2234_v56 = vadd.f32 %v2233_v53, %v2232_v52  ;;  %v2170_v57 = vpop.f32.mrb[38].mxu0  ;;  %v2111_v58 = vpop.f32.mrb[38].mxu1 }
 0x6f2   : > { %v5232_v60 = vpop.f32.mrb[39].mxu0  ;;  %v5224_v61 = vpop.f32.mrb[39].mxu1 }
 0x6f3   : > { %v2236_v63 = vadd.f32 %v2235_v59, %v2234_v56  ;;  %v2360_v59 = vsub.s32 6, %v5967_v41 }
 0x6f5   : > { %v2361_v60 = vrot.slane %v5973_v43, %v2360_v59  ;;  %v5589_v43 = vld [vmem:[%s6812_s3 + $0x100] sm:$0xff]  }
 0x6ff   : > { %v2226_v1 = vpop.f32.mrb[40].mxu1 }
 0x700   : > { %v2237_v3 = vsel %vm622_vm0, %v2226_v1, 0.0  ;;  %v5239_v4 = vpop.f32.mrb[41].mxu1 }
 0x701   : > { %v2238_v5 = vadd.f32 %v2237_v3, %v2236_v63  ;;  %v2229_v6 = vpop.f32.mrb[42].mxu1 }
 0x702   : > { %v5240_v7 = vpop.f32.mrb[43].mxu1 }
 0x703   : > { %v2243_v62 = vadd.f32 %v2242_v2, %v2238_v5 }
 0x705   : > { %v6260_v8 = vadd.f32 %v2243_v62, %v5939_v25  ;;  %v5580_v25 = vld [vmem:[%s6814_s5 + $0x8] sm:$0xff]  }
 0x706   : > { %5244 = vmatpush3.bf16.msra.mxu0 %v5580_v25  ;;  %v6354_v25 = vld [vmem:[%s6816_s7 + $0x8] sm:$0x7f] }
 0x707   : > { %v2245_v9 = vsel %vm622_vm0, %v6260_v8, 0.0  ;;  %5269 = vmatprep.subr.bf16.mxu0 %v5775_v34 }
 0x708   : > { %2246 = vadd.xlane.f32.xlu0 %v2245_v9 }
 0x795   : > { %v2247_v10 = vpop.xlane.xlu0 %2246 }
 0x796   : > { %v2248_v11 = vmul.f32 0.03125, %v2247_v10 }
 0x798   : > { %v2249_v12 = vsub.f32 %v6260_v8, %v2248_v11  ;;  %v5591_v11 = vld [vmem:[%s6812_s3 + $0x108] sm:$0xff]  }
 0x79a   : > { %v2250_v13 = vmul.f32 %v2249_v12, %v2249_v12 }
 0x79c   : > { %v2251_v15 = vsel %vm622_vm0, %v2250_v13, 0.0 }
 0x79d   : > { %2252 = vadd.xlane.f32.xlu1 %v2251_v15 }
 0x82a   : > { %v2253_v14 = vpop.xlane.xlu1 %2252 }
 0x82b   : > { %v2254_v17 = vmul.f32 0.03125, %v2253_v14  ;;  %v2547_v14 = vrot.slane %v6354_v25, %v639_v42  ;;  %v5595_v42 = vld [vmem:[%s6812_s3 + $0x118] sm:$0xff]  }
 0x82d   : > { %v2255_v18 = vadd.f32 1e-12, %v2254_v17 }
 0x82f   : > { %5649 = vrsqrt.f32 %v2255_v18  ;;  %v2552_v18 = vrot.slane %v6354_v25, %v5976_v44 }
 0x839   : > { %v5650_v22 = vpop.eup %5649 }
 0x83a   : > { %v2257_v23 = vmul.f32 %v5650_v22, %v2249_v12  ;;  %v5592_v12 = vld [vmem:[%s6812_s3 + $0x148] sm:$0xff]  }
 0x83c   : > { %v2262_v26 = vmul.f32 %v2261_v21, %v2257_v23 }
 0x83e   : > { %v2267_v27 = vadd.f32 %v2266_v24, %v2262_v26  ;;  %v5593_v24 = vld [vmem:[%s6812_s3 + $0x110] sm:$0xff]   ;;  %v5594_v26 = vld [vmem:[%s6812_s3 + $0x160] sm:$0xff]  }
 0x840   : > { %v2268_v28 = vpack.c.bf16 %v2267_v27, %v2267_v27 }
 0x842   : > { %5246 = vmatmul.mubr.msk.bf16.vlgmr.msra.gmra.mrb[40].mxu0 %vm622_vm0, %v2268_v28  ;;  %v5596_v28 = vld [vmem:[%s6812_s3 + $0x168] sm:$0xff]  }
 0x843   : > { %5273 = vmatprep.mubr.msk.bf16.mxu0 %vm5776_vm1, %v5775_v34  ;;  %5270 = vmatpush3.bf16.msra.mxu0 %v5589_v43 }
 0x844   : > { %5271 = vmatprep.subr.bf16.mxu0 %v5775_v34 }
 0x847   : > { %5272 = vmatpush3.bf16.msra.mxu0 %v5591_v11  ;;  %v4787_v11 = vld [vmem:[%s6813_s4 + $0xe] ss:$0 sm:$0xff] }
 0x848   : > { %5277 = vmatprep.subr.bf16.mxu0 %v5775_v34 }
 0x915   : > { %v2326_v40 = vpop.f32.mrb[40].mxu0 }
 0x916   : > { %v2327_v45 = vadd.f32 %v2326_v40, %v2276_v39  ;;  %v5247_v46 = vpop.f32.mrb[41].mxu0  ;;  %v5605_v39 = vld [vmem:[%s6812_s3 + $0x150] sm:$0xff]   ;;  %v5606_v40 = vld [vmem:[%s6812_s3 + $0x158] sm:$0xff]  }
 0x917   : > { %v2329_v47 = vpop.f32.mrb[42].mxu0  ;;  %v5608_v46 = vld [vmem:[%s6812_s3 + $0x178] sm:$0xff]  }
 0x918   : > { %v2332_v48 = vmul.f32 %v2327_v45, %v2327_v45  ;;  %v5248_v49 = vpop.f32.mrb[43].mxu0  ;;  %v5609_v47 = vld [vmem:[%s6812_s3 + $0x190] sm:$0xff]  }
 0x919   : > { %v5611_v49 = vld [vmem:[%s6812_s3 + $0x1b0] sm:$0xff]  }
 0x91a   : > { %v2333_v50 = vmul.f32 %v2332_v48, %v2327_v45  ;;  %v5610_v48 = vld [vmem:[%s6812_s3 + $0x198] sm:$0xff]  }
 0x91c   : > { %v2334_v51 = vmul.f32 0.044715, %v2333_v50  ;;  %v5612_v50 = vld [vmem:[%s6812_s3 + $0x1b8] sm:$0xff]  }
 0x91e   : > { %v2335_v52 = vadd.f32 %v2334_v51, %v2327_v45  ;;  %v4801_v51 = vld [vmem:[%s6813_s4 + $0x10] ss:$0 sm:$0xff] }
 0x920   : > { %v2336_v53 = vmul.f32 0.7978846, %v2335_v52 }
 0x922   : > { %5651 = vtanh.f32 %v2336_v53 }
 0x92c   : > { %v5652_v54 = vpop.eup %5651 }
 0x92d   : > { %v2338_v55 = vadd.f32 1.0, %v5652_v54  ;;  %v4785_v54 = vld [vmem:[%s6813_s4 + $0xc] ss:$0 sm:$0xff] }
 0x92f   : > { %v2339_v56 = vmul.f32 0.5, %v2338_v55 }
 0x931   : > { %v2340_v57 = vmul.f32 %v2339_v56, %v2327_v45  ;;  %v5607_v45 = vld [vmem:[%s6812_s3 + $0x170] sm:$0xff]  }
 0x933   : > { %v2341_v58 = vpack.c.bf16 %v2340_v57, %v2340_v57 }
 0x935   : > { %5266 = vmatmul.mubr.bf16.vlgmr.msra.gmra.mrb[44].mxu1 %v2341_v58 }
 0x936   : > { %5305 = vmatprep.mubr.msk.bf16.mxu1 %vm5776_vm1, %v5775_v34 }
 0xa08   : > { %v2444_v61 = vpop.f32.mrb[44].mxu1 }
 0xa09   : > { %v2445_v63 = vadd.f32 %v2444_v61, %v2361_v60  ;;  %v5267_v1 = vpop.f32.mrb[45].mxu1 }
 0xa0a   : > { %v2447_v2 = vpop.f32.mrb[46].mxu1 }
 0xa0b   : > { %v6329_v3 = vadd.f32 %v2445_v63, %v6260_v8  ;;  %v5268_v4 = vpop.f32.mrb[47].mxu1  ;;  %v5590_v8 = vld [vmem:[%s6812_s3 + $0x140] sm:$0xff]   ;;  %v4803_v2 = vld [vmem:[%s6813_s4 + $0x12] ss:$0 sm:$0xff] }
 0xa0c   : > { %5302 = vmatpush3.bf16.msra.mxu1 %v5590_v8 }
 0xa0d   : > { %v2531_v5 = vsel %vm622_vm0, %v6329_v3, 0.0  ;;  %5303 = vmatprep.subr.bf16.mxu1 %v5775_v34 }
 0xa0e   : > { %2532 = vadd.xlane.f32.xlu0 %v2531_v5 }
 0xa10   : > { %5304 = vmatpush3.bf16.msra.mxu1 %v5592_v12  ;;  %v4817_v12 = vld [vmem:[%s6813_s4 + $0x14] ss:$0 sm:$0xff] }
 0xa11   : > { %5317 = vmatprep.subr.bf16.mxu1 %v5775_v34 }
 0xa9b   : > { %v2533_v6 = vpop.xlane.xlu0 %2532 }
 0xa9c   : > { %v2534_v7 = vmul.f32 0.03125, %v2533_v6 }
 0xa9e   : > { %v2535_v62 = vsub.f32 %v6329_v3, %v2534_v7 }
 0xaa0   : > { %v2536_v9 = vmul.f32 %v2535_v62, %v2535_v62 }
 0xaa2   : > { %v2537_v10 = vsel %vm622_vm0, %v2536_v9, 0.0 }
 0xaa3   : > { %2538 = vadd.xlane.f32.xlu1 %v2537_v10 }
 0xb30   : > { %v2539_v13 = vpop.xlane.xlu1 %2538 }
 0xb31   : > { %v2540_v15 = vmul.f32 0.03125, %v2539_v13 }
 0xb33   : > { %v2541_v16 = vadd.f32 1e-12, %v2540_v15 }
 0xb35   : > { %5653 = vrsqrt.f32 %v2541_v16 }
 0xb3f   : > { %v5654_v17 = vpop.eup %5653 }
 0xb40   : > { %v2543_v21 = vmul.f32 %v5654_v17, %v2535_v62 }
 0xb42   : > { %v2548_v22 = vmul.f32 %v2547_v14, %v2543_v21 }
 0xb44   : > { %v2553_v23 = vadd.f32 %v2552_v18, %v2548_v22 }
 0xb46   : > { %v6367_v27 = vpack.c.bf16 %v2553_v23, %v2553_v23 }
 0xb48   : > { %5274 = vmatmul.mubr.msk.bf16.vlgmr.msra.gmra.mrb[44].mxu0 %vm622_vm0, %v6367_v27  ;;  %5306 = vmatmul.mubr.msk.bf16.vlgmr.msra.gmra.mrb[48].mxu1 %vm622_vm0, %v6367_v27 }
 0xb49   : > { %5278 = vmatpush3.bf16.msra.mxu0 %v5593_v24  ;;  %5318 = vmatpush3.bf16.msra.mxu1 %v5594_v26 }
 0xb4a   : > { %5279 = vmatprep.subr.bf16.mxu0 %v5775_v34  ;;  %5319 = vmatprep.subr.bf16.mxu1 %v5775_v34 }
 0xb4b   : > { %5281 = vmatprep.mubr.msk.bf16.mxu0 %vm5776_vm1, %v5775_v34  ;;  %5321 = vmatprep.mubr.msk.bf16.mxu1 %vm5776_vm1, %v5775_v34 }
 0xb4d   : > { %5280 = vmatpush3.bf16.msra.mxu0 %v5595_v42  ;;  %5320 = vmatpush3.bf16.msra.mxu1 %v5596_v28 }
 0xb4e   : > { %5285 = vmatprep.subr.bf16.mxu0 %v5775_v34  ;;  %5333 = vmatprep.subr.bf16.mxu1 %v5775_v34 }
 0xb50   : > { %5282 = vmatmul.mubr.msk.bf16.vlgmr.msra.gmra.mrb[48].mxu0 %vm622_vm0, %v6367_v27  ;;  %5322 = vmatmul.mubr.msk.bf16.vlgmr.msra.gmra.mrb[52].mxu1 %vm622_vm0, %v6367_v27 }
 0xb51   : > { %5286 = vmatpush3.bf16.msra.mxu0 %v5597_v29  ;;  %5334 = vmatpush3.bf16.msra.mxu1 %v5598_v30 }
 0xb52   : > { %5287 = vmatprep.subr.bf16.mxu0 %v5775_v34  ;;  %5335 = vmatprep.subr.bf16.mxu1 %v5775_v34 }
 0xb53   : > { %5289 = vmatprep.mubr.msk.bf16.mxu0 %vm5776_vm1, %v5775_v34  ;;  %5337 = vmatprep.mubr.msk.bf16.mxu1 %vm5776_vm1, %v5775_v34 }
 0xb55   : > { %5288 = vmatpush3.bf16.msra.mxu0 %v5599_v31  ;;  %5336 = vmatpush3.bf16.msra.mxu1 %v5600_v32 }
 0xb56   : > { %5293 = vmatprep.subr.bf16.mxu0 %v5775_v34  ;;  %5349 = vmatprep.subr.bf16.mxu1 %v5775_v34 }
 0xb58   : > { %5290 = vmatmul.mubr.msk.bf16.vlgmr.msra.gmra.mrb[52].mxu0 %vm622_vm0, %v6367_v27  ;;  %5338 = vmatmul.mubr.msk.bf16.vlgmr.msra.gmra.mrb[56].mxu1 %vm622_vm0, %v6367_v27 }
 0xb59   : > { %5294 = vmatpush3.bf16.msra.mxu0 %v5601_v33  ;;  %5350 = vmatpush3.bf16.msra.mxu1 %v5602_v35  ;;  %v4802_v33 = vld [vmem:[%s6813_s4 + $0x11] ss:$0 sm:$0xff] }
 0xb5a   : > { %5295 = vmatprep.subr.bf16.mxu0 %v5775_v34  ;;  %5351 = vmatprep.subr.bf16.mxu1 %v5775_v34 }
 0xb5b   : > { %5297 = vmatprep.mubr.msk.bf16.mxu0 %vm5776_vm1, %v5775_v34  ;;  %5353 = vmatprep.mubr.msk.bf16.mxu1 %vm5776_vm1, %v5775_v34 }
 0xb5d   : > { %5296 = vmatpush3.bf16.msra.mxu0 %v5603_v36  ;;  %5352 = vmatpush3.bf16.msra.mxu1 %v5604_v37  ;;  %v4786_v36 = vld [vmem:[%s6813_s4 + $0xd] ss:$0 sm:$0xff] }
 0xb5e   : > { %5309 = vmatprep.subr.bf16.mxu0 %v5775_v34  ;;  %5365 = vmatprep.subr.mxu1 %v5775_v34 }
 0xb60   : > { %5298 = vmatmul.mubr.msk.bf16.vlgmr.msra.gmra.mrb[56].mxu0 %vm622_vm0, %v6367_v27  ;;  %5354 = vmatmul.mubr.msk.bf16.vlgmr.msra.gmra.mrb[60].mxu1 %vm622_vm0, %v6367_v27 }
 0xb61   : > { %5310 = vmatpush3.bf16.msra.mxu0 %v5605_v39  ;;  %5313 = vmatprep.mubr.msk.bf16.mxu0 %vm5776_vm1, %v5775_v34 }
 0xb62   : > { %5311 = vmatprep.subr.bf16.mxu0 %v5775_v34  ;;  %5367 = vmatprep.mubr.msk.f32.mxu1 %vm5776_vm1, %v5775_v34 }
 0xb65   : > { %5312 = vmatpush3.bf16.msra.mxu0 %v5606_v40 }
 0xb66   : > { %5325 = vmatprep.subr.bf16.mxu0 %v5775_v34 }
 0xb68   : > { %5314 = vmatmul.mubr.msk.bf16.vlgmr.msra.gmra.mrb[60].mxu0 %vm622_vm0, %v6367_v27 }
 0xb69   : > { %5326 = vmatpush3.bf16.msra.mxu0 %v5607_v45  ;;  %5329 = vmatprep.mubr.msk.bf16.mxu0 %vm5776_vm1, %v5775_v34 }
 0xb6a   : > { %5327 = vmatprep.subr.bf16.mxu0 %v5775_v34 }
 0xb6d   : > { %5328 = vmatpush3.bf16.msra.mxu0 %v5608_v46 }
 0xb6e   : > { %5341 = vmatprep.subr.bf16.mxu0 %v5775_v34 }
 0xb70   : > { %5330 = vmatmul.mubr.msk.bf16.vlgmr.msra.gmra.mrb[64].mxu0 %vm622_vm0, %v6367_v27 }
 0xb71   : > { %5342 = vmatpush3.bf16.msra.mxu0 %v5609_v47  ;;  %5345 = vmatprep.mubr.msk.bf16.mxu0 %vm5776_vm1, %v5775_v34  ;;  %v4804_v47 = vld [vmem:[%s6813_s4 + $0x13] ss:$0 sm:$0xff] }
 0xb72   : > { %5343 = vmatprep.subr.bf16.mxu0 %v5775_v34 }
 0xb75   : > { %5344 = vmatpush3.bf16.msra.mxu0 %v5610_v48 }
 0xb76   : > { %5357 = vmatprep.subr.bf16.mxu0 %v5775_v34 }
 0xb78   : > { %5346 = vmatmul.mubr.msk.bf16.vlgmr.msra.gmra.mrb[68].mxu0 %vm622_vm0, %v6367_v27 }
 0xb79   : > { %5358 = vmatpush3.bf16.msra.mxu0 %v5611_v49  ;;  %5361 = vmatprep.mubr.msk.bf16.mxu0 %vm5776_vm1, %v5775_v34  ;;  %v4788_v49 = vld [vmem:[%s6813_s4 + $0xf] ss:$0 sm:$0xff] }
 0xb7a   : > { %5359 = vmatprep.subr.bf16.mxu0 %v5775_v34 }
 0xb7d   : > { %5360 = vmatpush3.bf16.msra.mxu0 %v5612_v50 }
 0xb7e   : > { %5375 = vmatprep.subr.mxu0 %v5775_v34 }
 0xb80   : > { %5362 = vmatmul.mubr.msk.bf16.vlgmr.msra.gmra.mrb[72].mxu0 %vm622_vm0, %v6367_v27 }
 0xb81   : > { %5377 = vmatprep.mubr.msk.f32.mxu0 %vm5776_vm1, %v5775_v34 }
 0xc1b   : > { %v2628_v52 = vpop.f32.mrb[44].mxu0  ;;  %v2860_v53 = vpop.f32.mrb[48].mxu1 }
 0xc1c   : > { %v2861_v55 = vadd.f32 %v4801_v51, %v2860_v53  ;;  %v5275_v56 = vpop.f32.mrb[45].mxu0  ;;  %v5307_v57 = vpop.f32.mrb[49].mxu1  ;;  %v2629_v1 = vadd.f32 %v4785_v54, %v2628_v52 }
 0xc1d   : > { %v2631_v58 = vpop.f32.mrb[46].mxu0  ;;  %v2863_v60 = vpop.f32.mrb[50].mxu1 }
 0xc1e   : > { %v5276_v61 = vpop.f32.mrb[47].mxu0  ;;  %v5308_v63 = vpop.f32.mrb[51].mxu1  ;;  %5366 = vmatpush3.xpose.msk.msra.mxu1 %vm1347_vm2, %v2861_v55  ;;  %v4818_v55 = vld [vmem:[%s6813_s4 + $0x15] ss:$0 sm:$0xff] }
 0xc1f   : > { %5370 = vmatprep.subr.mxu1 %v5775_v34 }
 0xc21   : > { %5368 = vmatmul.mubr.msk.f32.vlgmr.msra.gmra.mrb[64].mxu1 %vm1347_vm2, %v2629_v1 }
 0xc22   : > { %5372 = vmatprep.mubr.msk.f32.mxu1 %vm5776_vm1, %v5775_v34 }
 0xc23   : > { %v2680_v4 = vpop.f32.mrb[48].mxu0  ;;  %v2964_v5 = vpop.f32.mrb[52].mxu1 }
 0xc24   : > { %v2965_v6 = vadd.f32 %v4803_v2, %v2964_v5  ;;  %v5283_v7 = vpop.f32.mrb[49].mxu0  ;;  %v5323_v62 = vpop.f32.mrb[53].mxu1  ;;  %v2681_v46 = vadd.f32 %v4786_v36, %v2680_v4 }
 0xc25   : > { %v2683_v9 = vpop.f32.mrb[50].mxu0  ;;  %v2967_v10 = vpop.f32.mrb[54].mxu1 }
 0xc26   : > { %v5284_v43 = vpop.f32.mrb[51].mxu0  ;;  %v5324_v8 = vpop.f32.mrb[55].mxu1  ;;  %5376 = vmatpush3.xpose.msk.msra.mxu0 %vm1347_vm2, %v2965_v6 }
 0xc27   : > { %5385 = vmatprep.subr.mxu0 %v5775_v34 }
 0xc2b   : > { %v2732_v13 = vpop.f32.mrb[52].mxu0  ;;  %v3092_v15 = vpop.f32.mrb[56].mxu1 }
 0xc2c   : > { %v2733_v16 = vadd.f32 %v4787_v11, %v2732_v13  ;;  %v3093_v14 = vadd.f32 %v4817_v12, %v3092_v15  ;;  %v5291_v17 = vpop.f32.mrb[53].mxu0  ;;  %v5339_v18 = vpop.f32.mrb[57].mxu1 }
 0xc2d   : > { %v2735_v21 = vpop.f32.mrb[54].mxu0  ;;  %v3095_v22 = vpop.f32.mrb[58].mxu1 }
 0xc2e   : > { %v5292_v23 = vpop.f32.mrb[55].mxu0  ;;  %v5340_v24 = vpop.f32.mrb[59].mxu1  ;;  %5378 = vmatmul.mubr.msk.f32.vlgmr.msra.gmra.mrb[76].mxu0 %vm1347_vm2, %v2733_v16 }
 0xc2f   : > { %5386 = vmatpush3.msra.mxu0 %v3093_v14  ;;  %5387 = vmatprep.mubr.msk.f32.mxu0 %vm5776_vm1, %v5775_v34 }
 0xc30   : > { %5395 = vmatprep.subr.mxu0 %v5775_v34 }
 0xc33   : > { %v2784_v26 = vpop.f32.mrb[56].mxu0  ;;  %v6517_v27 = vpop.f32.mrb[60].mxu1 }
 0xc34   : > { %v5299_v42 = vpop.f32.mrb[57].mxu0  ;;  %v5355_v28 = vpop.f32.mrb[61].mxu1  ;;  %v2785_v54 = vadd.f32 %v4788_v49, %v2784_v26  ;;  %v4819_v49 = vld [vmem:[%s6813_s4 + $0x16] ss:$0 sm:$0xff] }
 0xc35   : > { %v2787_v29 = vpop.f32.mrb[58].mxu0  ;;  %v3199_v30 = vpop.f32.mrb[62].mxu1 }
 0xc36   : > { %v5300_v31 = vpop.f32.mrb[59].mxu0  ;;  %v5356_v32 = vpop.f32.mrb[63].mxu1 }
 0xc3b   : > { %v2912_v35 = vpop.f32.mrb[60].mxu0 }
 0xc3c   : > { %v2913_v37 = vadd.f32 %v4802_v33, %v2912_v35  ;;  %v5315_v39 = vpop.f32.mrb[61].mxu0 }
 0xc3d   : > { %v2915_v40 = vpop.f32.mrb[62].mxu0 }
 0xc3e   : > { %v5316_v45 = vpop.f32.mrb[63].mxu0  ;;  %5371 = vmatpush3.xpose.msk.msra.mxu1 %vm1347_vm2, %v2913_v37 }
 0xc3f   : > { %5380 = vmatprep.subr.mxu1 %v5775_v34 }
 0xc41   : > { %5373 = vmatmul.mubr.msk.f32.vlgmr.msra.gmra.mrb[66].mxu1 %vm1347_vm2, %v2681_v46 }
 0xc42   : > { %5382 = vmatprep.mubr.msk.f32.mxu1 %vm5776_vm1, %v5775_v34 }
 0xc43   : > { %v3016_v48 = vpop.f32.mrb[64].mxu0 }
 0xc44   : > { %v3017_v50 = vadd.f32 %v4804_v47, %v3016_v48  ;;  %v5331_v51 = vpop.f32.mrb[65].mxu0 }
 0xc45   : > { %v3019_v52 = vpop.f32.mrb[66].mxu0 }
 0xc46   : > { %v5332_v53 = vpop.f32.mrb[67].mxu0  ;;  %5381 = vmatpush3.xpose.msk.msra.mxu1 %vm1347_vm2, %v3017_v50  ;;  %v3197_v52 = vadd.f32 %v4819_v49, %v6517_v27  ;;  %v5614_v27 = vld [vmem:[%s6812_s3 + $0x1c8] sm:$0xff]  }
 0xc47   : > { %5390 = vmatprep.subr.mxu1 %v5775_v34 }
 0xc49   : > { %5383 = vmatmul.mubr.msk.f32.vlgmr.msra.gmra.mrb[68].mxu1 %vm1347_vm2, %v2785_v54  ;;  %v5613_v54 = vld [vmem:[%s6812_s3 + $0x1c0] sm:$0xff]  }
 0xc4a   : > { %5392 = vmatprep.mubr.msk.f32.mxu1 %vm5776_vm1, %v5775_v34 }
 0xc4b   : > { %v3144_v56 = vpop.f32.mrb[68].mxu0 }
 0xc4c   : > { %v3145_v57 = vadd.f32 %v4818_v55, %v3144_v56  ;;  %v5347_v58 = vpop.f32.mrb[69].mxu0 }
 0xc4d   : > { %v3147_v60 = vpop.f32.mrb[70].mxu0 }
 0xc4e   : > { %v5348_v61 = vpop.f32.mrb[71].mxu0  ;;  %5391 = vmatpush3.msra.mxu1 %v3145_v57  ;;  %v3916_v57 = vsel %vm1347_vm2, %v5613_v54, 0  ;;  %v3919_v60 = vsel %vm1347_vm2, %v5614_v27, 0 }
 0xc4f   : > { %5400 = vmatprep.subr.mxu1 %v5775_v34 }
 0xc53   : > { %v6545_v63 = vpop.f32.mrb[72].mxu0 }
 0xc54   : > { %v5363_v1 = vpop.f32.mrb[73].mxu0 }
 0xc55   : > { %v3251_v2 = vpop.f32.mrb[74].mxu0  ;;  %v4820_v1 = vld [vmem:[%s6813_s4 + $0x17] ss:$0 sm:$0xff] }
 0xc56   : > { %v5364_v4 = vpop.f32.mrb[75].mxu0 }
 0xcf4   : > { %v3326_v5 = vpop.f32.mrb[64].mxu1 }
 0xcf5   : > { %v3558_v6 = vmul.f32 0.35355338, %v3326_v5  ;;  %v5369_v7 = vpop.f32.mrb[65].mxu1  ;;  %v3249_v5 = vadd.f32 %v4820_v1, %v6545_v63 }
 0xcf7   : > { %v3562_v62 = vsel %vm1347_vm2, %v3558_v6, -inf }
 0xcf8   : > { %3563 = vmax.xlane.f32.xlu0 %v3562_v62  ;;  %v5617_v62 = vld [vmem:[%s6812_s3 + $0x1d0] sm:$0xff]  }
 0xcf9   : > { %v3975_v63 = vsel %vm1347_vm2, %v5617_v62, 0 }
 0xd01   : > { %v3478_v9 = vpop.f32.mrb[76].mxu0 }
 0xd02   : > { %v3560_v10 = vmul.f32 0.35355338, %v3478_v9  ;;  %v5379_v43 = vpop.f32.mrb[77].mxu0  ;;  %v5618_v9 = vld [vmem:[%s6812_s3 + $0x1d8] sm:$0xff]  }
 0xd03   : > { %v5615_v43 = vld [vmem:[%s6812_s3 + $0x1e0] sm:$0xff]  }
 0xd04   : > { %v3568_v8 = vsel %vm1347_vm2, %v3560_v10, -inf }
 0xd05   : > { %3569 = vmax.xlane.f32.xlu0 %v3568_v8 }
 0xd14   : > { %v3402_v11 = vpop.f32.mrb[66].mxu1 }
 0xd15   : > { %v3559_v12 = vmul.f32 0.35355338, %v3402_v11  ;;  %v5374_v13 = vpop.f32.mrb[67].mxu1 }
 0xd16   : > { %v4034_v13 = vsel %vm1347_vm2, %v5615_v43, 0 }
 0xd17   : > { %v3565_v15 = vsel %vm1347_vm2, %v3559_v12, -inf }
 0xd18   : > { %3566 = vmax.xlane.f32.xlu1 %v3565_v15  ;;  %v5616_v15 = vld [vmem:[%s6812_s3 + $0x1e8] sm:$0xff]  }
 0xd1c   : > { %v3554_v16 = vpop.f32.mrb[68].mxu1 }
 0xd1d   : > { %v3561_v14 = vmul.f32 0.35355338, %v3554_v16  ;;  %v5384_v17 = vpop.f32.mrb[69].mxu1  ;;  %v4037_v16 = vsel %vm1347_vm2, %v5616_v15, 0 }
 0xd1f   : > { %v3571_v18 = vsel %vm1347_vm2, %v3561_v14, -inf }
 0xd20   : > { %3572 = vmax.xlane.f32.xlu1 %v3571_v18 }
 0xd85   : > { %v3564_v21 = vpop.xlane.xlu0 %3563 }
 0xd86   : > { %v3574_v22 = vsub.f32 %v3558_v6, %v3564_v21  ;;  %v5619_v21 = vld [vmem:[%s6812_s3 + $0x1f0] sm:$0xff]  }
 0xd88   : > { %v3578_v23 = vmul.f32 1.442695, %v3574_v22 }
 0xd8a   : > { %5655 = vpow2.f32 %v3578_v23 }
 0xd92   : > { %v3570_v24 = vpop.xlane.xlu0 %3569 }
 0xd93   : > { %v3576_v26 = vsub.f32 %v3560_v10, %v3570_v24  ;;  %v3978_v10 = vsel %vm1347_vm2, %v5618_v9, 0 }
 0xd94   : > { %v5656_v42 = vpop.eup %5655 }
 0xd95   : > { %v3582_v28 = vmul.f32 1.442695, %v3576_v26  ;;  %v3586_v29 = vsel %vm1347_vm2, %v5656_v42, 0.0  ;;  %v4093_v26 = vsel %vm1347_vm2, %v5619_v21, 0  ;;  %v5626_v21 = vld [vmem:[%s6815_s6 + $0x58] sm:$0xff]  }
 0xd96   : > { %3587 = vadd.xlane.f32.xlu0 %v3586_v29 }
 0xd97   : > { %5657 = vpow2.f32 %v3582_v28 }
 0xda1   : > { %v5658_v30 = vpop.eup %5657 }
 0xda2   : > { %v3592_v31 = vsel %vm1347_vm2, %v5658_v30, 0.0 }
 0xda3   : > { %3593 = vadd.xlane.f32.xlu0 %v3592_v31 }
 0xda5   : > { %v3567_v32 = vpop.xlane.xlu1 %3566 }
 0xda6   : > { %v3575_v33 = vsub.f32 %v3559_v12, %v3567_v32 }
 0xda8   : > { %v3580_v35 = vmul.f32 1.442695, %v3575_v33 }
 0xdaa   : > { %5659 = vpow2.f32 %v3580_v35 }
 0xdad   : > { %v3573_v36 = vpop.xlane.xlu1 %3572 }
 0xdae   : > { %v3577_v37 = vsub.f32 %v3561_v14, %v3573_v36 }
 0xdb0   : > { %v3584_v39 = vmul.f32 1.442695, %v3577_v37 }
 0xdb2   : > { %5661 = vpow2.f32 %v3584_v39 }
 0xdb4   : > { %v5660_v40 = vpop.eup %5659 }
 0xdb5   : > { %v3589_v45 = vsel %vm1347_vm2, %v5660_v40, 0.0 }
 0xdb6   : > { %3590 = vadd.xlane.f32.xlu1 %v3589_v45 }
 0xdbc   : > { %v5662_v46 = vpop.eup %5661 }
 0xdbd   : > { %v3595_v47 = vsel %vm1347_vm2, %v5662_v46, 0.0 }
 0xdbe   : > { %3596 = vadd.xlane.f32.xlu1 %v3595_v47 }
 0xe23   : > { %v3588_v48 = vpop.xlane.xlu0 %3587 }
 0xe24   : > { %5663 = vrcp.f32 %v3588_v48 }
 0xe2e   : > { %v5664_v50 = vpop.eup %5663 }
 0xe2f   : > { %v3602_v51 = vmul.f32 %v5664_v50, %v5656_v42  ;;  %v5620_v42 = vld [vmem:[%s6812_s3 + $0x1f8] sm:$0xff]  }
 0xe30   : > { %v3594_v53 = vpop.xlane.xlu0 %3593 }
 0xe31   : > { %5665 = vrcp.f32 %v3594_v53  ;;  %5388 = vmatmul.mubr.msk.f32.vlgmr.msra.gmra.mrb[78].mxu0 %vm1347_vm2, %v3602_v51 }
 0xe32   : > { %5396 = vmatpush3.msra.mxu0 %v3197_v52  ;;  %5397 = vmatprep.mubr.msk.f32.mxu0 %vm5776_vm1, %v5775_v34 }
 0xe33   : > { %5405 = vmatprep.subr.bf16.mxu0 %v5775_v34 }
 0xe3b   : > { %v5666_v55 = vpop.eup %5665 }
 0xe3c   : > { %v3604_v56 = vmul.f32 %v5666_v55, %v5658_v30  ;;  %v4096_v30 = vsel %vm1347_vm2, %v5620_v42, 0  ;;  %v4183_v42 = vrot.slane %v6354_v25, %v2275_v38  ;;  %v4269_v38 = vrot.slane %v6354_v25, %v2360_v59 }
 0xe3e   : > { %5398 = vmatmul.mubr.msk.f32.vlgmr.msra.gmra.mrb[80].mxu0 %vm1347_vm2, %v3604_v56  ;;  %v4148_v56 = vrot.slane %v6354_v25, %v2241_v0 }
 0xe3f   : > { %5406 = vmatpush3.bf16.xpose.msra.mxu0 %v3916_v57  ;;  %5409 = vmatprep.mubr.msk.bf16.mxu0 %vm5776_vm1, %v5775_v34 }
 0xe40   : > { %5407 = vmatprep.subr.bf16.mxu0 %v5775_v34 }
 0xe43   : > { %v3591_v58 = vpop.xlane.xlu1 %3590 }
 0xe44   : > { %5667 = vrcp.f32 %v3591_v58 }
 0xe47   : > { %5408 = vmatpush3.bf16.xpose.msra.mxu0 %v3919_v60 }
 0xe48   : > { %5421 = vmatprep.subr.bf16.mxu0 %v5775_v34 }
 0xe4b   : > { %v3597_v61 = vpop.xlane.xlu1 %3596 }
 0xe4c   : > { %5669 = vrcp.f32 %v3597_v61 }
 0xe4e   : > { %v5668_v2 = vpop.eup %5667 }
 0xe4f   : > { %v3603_v4 = vmul.f32 %v5668_v2, %v5660_v40 }
 0xe51   : > { %5393 = vmatmul.mubr.msk.f32.vlgmr.msra.gmra.mrb[70].mxu1 %vm1347_vm2, %v3603_v4 }
 0xe52   : > { %5401 = vmatpush3.msra.mxu1 %v3249_v5  ;;  %5402 = vmatprep.mubr.msk.f32.mxu1 %vm5776_vm1, %v5775_v34 }
 0xe53   : > { %5413 = vmatprep.subr.bf16.mxu1 %v5775_v34 }
 0xe56   : > { %v5670_v6 = vpop.eup %5669 }
 0xe57   : > { %v3605_v7 = vmul.f32 %v5670_v6, %v5662_v46 }
 0xe59   : > { %5403 = vmatmul.mubr.msk.f32.vlgmr.msra.gmra.mrb[72].mxu1 %vm1347_vm2, %v3605_v7 }
 0xe5a   : > { %5417 = vmatprep.mubr.msk.bf16.mxu1 %vm5776_vm1, %v5775_v34  ;;  %5414 = vmatpush3.bf16.xpose.msra.mxu1 %v3975_v63  ;;  %v5621_v63 = vld [vmem:[%s6814_s5 + $0x10] sm:$0xff]  }
 0xe5b   : > { %5415 = vmatprep.subr.bf16.mxu1 %v5775_v34 }
 0xe62   : > { %5416 = vmatpush3.bf16.xpose.msra.mxu1 %v3978_v10 }
 0xe63   : > { %5429 = vmatprep.subr.bf16.mxu1 %v5775_v34 }
 0xf04   : > { %v3675_v8 = vpop.f32.mrb[78].mxu0 }
 0xf05   : > { %v3898_v11 = vpack.c.bf16 %v3675_v8, %v3675_v8  ;;  %v5389_v12 = vpop.f32.mrb[79].mxu0  ;;  %v4167_v8 = vrot.slane %v6354_v25, %v6275_v19 }
 0xf07   : > { %5410 = vmatmul.mubr.msk.bf16.vlgmr.msra.gmra.mrb[84].mxu0 %vm1347_vm2, %v3898_v11 }
 0xf08   : > { %5422 = vmatpush3.bf16.xpose.msra.mxu0 %v4034_v13  ;;  %5425 = vmatprep.mubr.msk.bf16.mxu0 %vm5776_vm1, %v5775_v34  ;;  %v4172_v13 = vrot.slane %v6354_v25, %v2265_v20  ;;  %v5625_v20 = vld [vmem:[%s6815_s6 + $0x50] sm:$0xff]  }
 0xf09   : > { %5423 = vmatprep.subr.bf16.mxu0 %v5775_v34 }
 0xf10   : > { %5424 = vmatpush3.bf16.xpose.msra.mxu0 %v4037_v16 }
 0xf11   : > { %v3821_v14 = vpop.f32.mrb[80].mxu0  ;;  %5437 = vmatprep.subr.bf16.mxu0 %v5775_v34 }
 0xf12   : > { %v5399_v17 = vpop.f32.mrb[81].mxu0  ;;  %v3900_v18 = vpack.c.bf16 %v3821_v14, %v3821_v14 }
 0xf13   : > { %v5623_v17 = vld [vmem:[%s6815_s6 + $0x40] sm:$0xff]  }
 0xf17   : > { %5426 = vmatmul.mubr.msk.bf16.vlgmr.msra.gmra.mrb[88].mxu0 %vm1347_vm2, %v3900_v18  ;;  %v5624_v18 = vld [vmem:[%s6815_s6 + $0x48] sm:$0xff]  }
 0xf18   : > { %5441 = vmatprep.mubr.msk.bf16.mxu0 %vm5776_vm1, %v5775_v34  ;;  %5438 = vmatpush3.bf16.msra.mxu0 %v5621_v63 }
 0xf19   : > { %5439 = vmatprep.subr.bf16.mxu0 %v5775_v34 }
 0xf24   : > { %v3748_v22 = vpop.f32.mrb[70].mxu1 }
 0xf25   : > { %v3899_v23 = vpack.c.bf16 %v3748_v22, %v3748_v22  ;;  %v5394_v24 = vpop.f32.mrb[71].mxu1  ;;  %v5627_v22 = vld [vmem:[%s6815_s6 + $0x60] sm:$0xff]  }
 0xf26   : > { %v5629_v24 = vld [vmem:[%s6815_s6 + $0x70] sm:$0xff]  }
 0xf27   : > { %5418 = vmatmul.mubr.msk.bf16.vlgmr.msra.gmra.mrb[76].mxu1 %vm1347_vm2, %v3899_v23  ;;  %v5628_v23 = vld [vmem:[%s6815_s6 + $0x68] sm:$0xff]  }
 0xf28   : > { %5430 = vmatpush3.bf16.xpose.msra.mxu1 %v4093_v26  ;;  %5433 = vmatprep.mubr.msk.bf16.mxu1 %vm5776_vm1, %v5775_v34  ;;  %v5630_v26 = vld [vmem:[%s6815_s6 + $0x78] sm:$0xff]  }
 0xf29   : > { %5431 = vmatprep.subr.bf16.mxu1 %v5775_v34 }
 0xf2c   : > { %v3894_v28 = vpop.f32.mrb[72].mxu1 }
 0xf2d   : > { %v5404_v29 = vpop.f32.mrb[73].mxu1  ;;  %v3901_v31 = vpack.c.bf16 %v3894_v28, %v3894_v28 }
 0xf30   : > { %5432 = vmatpush3.bf16.xpose.msra.mxu1 %v4096_v30 }
 0xf31   : > { %5445 = vmatprep.subr.bf16.mxu1 %v5775_v34 }
 0xf37   : > { %5434 = vmatmul.mubr.msk.bf16.vlgmr.msra.gmra.mrb[80].mxu1 %vm1347_vm2, %v3901_v31 }
 0xf38   : > { %5461 = vmatprep.mubr.msk.bf16.mxu1 %vm5776_vm1, %v5775_v34  ;;  %5446 = vmatpush3.bf16.msra.mxu1 %v5623_v17 }
 0xf39   : > { %5447 = vmatprep.subr.bf16.mxu1 %v5775_v34 }
 0xf3c   : > { %5448 = vmatpush3.bf16.msra.mxu1 %v5624_v18 }
 0xf3d   : > { %5449 = vmatprep.subr.bf16.mxu1 %v5775_v34 }
 0xf40   : > { %5450 = vmatpush3.bf16.msra.mxu1 %v5625_v20 }
 0xf41   : > { %5451 = vmatprep.subr.bf16.mxu1 %v5775_v34 }
 0xf44   : > { %5452 = vmatpush3.bf16.msra.mxu1 %v5626_v21 }
 0xf45   : > { %5453 = vmatprep.subr.bf16.mxu1 %v5775_v34 }
 0xf48   : > { %5454 = vmatpush3.bf16.msra.mxu1 %v5627_v22 }
 0xf49   : > { %5455 = vmatprep.subr.bf16.mxu1 %v5775_v34 }
 0xf4c   : > { %5456 = vmatpush3.bf16.msra.mxu1 %v5628_v23 }
 0xf4d   : > { %5457 = vmatprep.subr.bf16.mxu1 %v5775_v34 }
 0xf50   : > { %5458 = vmatpush3.bf16.msra.mxu1 %v5629_v24 }
 0xf51   : > { %5459 = vmatprep.subr.bf16.mxu1 %v5775_v34 }
 0xf54   : > { %5460 = vmatpush3.bf16.msra.mxu1 %v5630_v26 }
 0xfda   : > { %v3955_v32 = vpop.f32.mrb[84].mxu0 }
 0xfdb   : > { %v5411_v33 = vpop.f32.mrb[85].mxu0  ;;  %v4138_v47 = vsel %vm622_vm0, %v3955_v32, 0.0 }
 0xfdc   : > { %v3958_v35 = vpop.f32.mrb[86].mxu0 }
 0xfdd   : > { %v5412_v36 = vpop.f32.mrb[87].mxu0 }
 0xfea   : > { %v4073_v37 = vpop.f32.mrb[88].mxu0 }
 0xfeb   : > { %v5427_v39 = vpop.f32.mrb[89].mxu0  ;;  %v4141_v52 = vsel %vm622_vm0, %v4073_v37, 0.0 }
 0xfec   : > { %v4076_v40 = vpop.f32.mrb[90].mxu0 }
 0xfed   : > { %v5428_v45 = vpop.f32.mrb[91].mxu0 }
 0xffa   : > { %v4014_v46 = vpop.f32.mrb[76].mxu1 }
 0xffb   : > { %v4139_v48 = vsel %vm622_vm0, %v4014_v46, 0.0  ;;  %v5419_v49 = vpop.f32.mrb[77].mxu1 }
 0xffc   : > { %v4140_v50 = vadd.f32 %v4139_v48, %v4138_v47  ;;  %v4017_v51 = vpop.f32.mrb[78].mxu1 }
 0xffd   : > { %v5420_v53 = vpop.f32.mrb[79].mxu1 }
 0xffe   : > { %v4142_v54 = vadd.f32 %v4141_v52, %v4140_v50 }
0x100a   : > { %v4132_v55 = vpop.f32.mrb[80].mxu1 }
0x100b   : > { %v4143_v57 = vsel %vm622_vm0, %v4132_v55, 0.0  ;;  %v5435_v27 = vpop.f32.mrb[81].mxu1 }
0x100c   : > { %v4144_v58 = vadd.f32 %v4143_v57, %v4142_v54  ;;  %v4135_v60 = vpop.f32.mrb[82].mxu1 }
0x100d   : > { %v5436_v61 = vpop.f32.mrb[83].mxu1  ;;  %v6708_v60 = vld [vmem:[%s6817_s8 + $0x20] sm:$0x1f] }
0x100e   : > { %v4149_v1 = vadd.f32 %v4148_v56, %v4144_v58  ;;  %v4380_v61 = vrot.slane %v6708_v60, %v5976_v44  ;;  %v4359_v44 = vld [vmem:[%s6817_s8] sm:$0xff]  ;;  %v4407_v20 = vrot.slane %v6708_v60, 3  ;;  %v4410_v23 = vrot.slane %v6708_v60, 4 }
0x1010   : > { %v6637_v2 = vadd.f32 %v4149_v1, %v6329_v3  ;;  %v5622_v3 = vld [vmem:[%s6814_s5 + $0x18] sm:$0xff]  }
0x1011   : > { %5440 = vmatpush3.bf16.msra.mxu0 %v5622_v3 }
0x1012   : > { %v4151_v4 = vsel %vm622_vm0, %v6637_v2, 0.0 }
0x1013   : > { %4152 = vadd.xlane.f32.xlu0 %v4151_v4  ;;  %v4385_v4 = vrot.slane %v6708_v60, %v6275_v19  ;;  %v4360_v19 = vld [vmem:[%s6817_s8 + $0x8] sm:$0xff] }
0x10a0   : > { %v4153_v5 = vpop.xlane.xlu0 %4152 }
0x10a1   : > { %v4154_v6 = vmul.f32 0.03125, %v4153_v5 }
0x10a3   : > { %v4155_v7 = vsub.f32 %v6637_v2, %v4154_v6 }
0x10a5   : > { %v4156_v62 = vmul.f32 %v4155_v7, %v4155_v7 }
0x10a7   : > { %v4157_v0 = vsel %vm622_vm0, %v4156_v62, 0.0 }
0x10a8   : > { %4158 = vadd.xlane.f32.xlu1 %v4157_v0 }
0x1135   : > { %v4159_v9 = vpop.xlane.xlu1 %4158 }
0x1136   : > { %v4160_v10 = vmul.f32 0.03125, %v4159_v9 }
0x1138   : > { %v4161_v43 = vadd.f32 1e-12, %v4160_v10 }
0x113a   : > { %5671 = vrsqrt.f32 %v4161_v43 }
0x1144   : > { %v5672_v11 = vpop.eup %5671 }
0x1145   : > { %v4163_v12 = vmul.f32 %v5672_v11, %v4155_v7  ;;  %v5477_v11 = vpack.c.bf16 %v4360_v19, %v4359_v44 }
0x1147   : > { %v4168_v15 = vmul.f32 %v4167_v8, %v4163_v12  ;;  %v5777_v12 = vmov 0.0|0.0  }
0x1148   : > { %5476 = vmatprep.subr.bf16.mxu0 %v5777_v12 }
0x1149   : > { %v4173_v16 = vadd.f32 %v4172_v13, %v4168_v15  ;;  %v4361_v13 = vld [vmem:[%s6817_s8 + $0x10] sm:$0xff]  ;;  %v4362_v15 = vld [vmem:[%s6817_s8 + $0x18] sm:$0xff] }
0x114b   : > { %v4174_v14 = vpack.c.bf16 %v4173_v16, %v4173_v16  ;;  %v5480_v16 = vpack.c.bf16 %v4362_v15, %v4361_v13 }
0x114d   : > { %5442 = vmatmul.mubr.msk.bf16.vlgmr.msra.gmra.mrb[92].mxu0 %vm622_vm0, %v4174_v14 }
0x114e   : > { %5473 = vmatprep.mubr.msk.f32.mxu0 %vm5776_vm1, %v5775_v34  ;;  %5478 = vmatpush3.bf16.msra.mxu0 %v5477_v11 }
0x114f   : > { %5479 = vmatprep.subr.bf16.mxu0 %v5777_v12 }
0x1152   : > { %5481 = vmatpush3.bf16.msra.mxu0 %v5480_v16 }
0x1220   : > { %v4233_v28 = vpop.f32.mrb[92].mxu0 }
0x1221   : > { %v4234_v29 = vadd.f32 %v4233_v28, %v4183_v42  ;;  %v5443_v30 = vpop.f32.mrb[93].mxu0 }
0x1222   : > { %v4236_v31 = vpop.f32.mrb[94].mxu0 }
0x1223   : > { %v4239_v32 = vmul.f32 %v4234_v29, %v4234_v29  ;;  %v5444_v33 = vpop.f32.mrb[95].mxu0 }
0x1225   : > { %v4240_v35 = vmul.f32 %v4239_v32, %v4234_v29 }
0x1227   : > { %v4241_v36 = vmul.f32 0.044715, %v4240_v35 }
0x1229   : > { %v4242_v37 = vadd.f32 %v4241_v36, %v4234_v29 }
0x122b   : > { %v4243_v39 = vmul.f32 0.7978846, %v4242_v37 }
0x122d   : > { %5673 = vtanh.f32 %v4243_v39 }
0x1237   : > { %v5674_v40 = vpop.eup %5673 }
0x1238   : > { %v4245_v45 = vadd.f32 1.0, %v5674_v40 }
0x123a   : > { %v4246_v34 = vmul.f32 0.5, %v4245_v45 }
0x123c   : > { %v4247_v46 = vmul.f32 %v4246_v34, %v4234_v29 }
0x123e   : > { %v4248_v47 = vpack.c.bf16 %v4247_v46, %v4247_v46 }
0x1240   : > { %5462 = vmatmul.mubr.bf16.vlgmr.msra.gmra.mrb[84].mxu1 %v4248_v47 }
0x1313   : > { %v4352_v48 = vpop.f32.mrb[84].mxu1 }
0x1314   : > { %v4353_v49 = vadd.f32 %v4352_v48, %v4269_v38  ;;  %v5463_v50 = vpop.f32.mrb[85].mxu1 }
0x1315   : > { %v4355_v51 = vpop.f32.mrb[86].mxu1 }
0x1316   : > { %v4358_v52 = vadd.f32 %v4353_v49, %v6637_v2  ;;  %v5464_v53 = vpop.f32.mrb[87].mxu1 }
0x1318   : > { %v4364_v54 = vsel %vm622_vm0, %v4358_v52, 0.0  ;;  %4487 = vst.msk [vmem:[%s361_s27] sm:$0x1] %vm4392_vm3, %v4358_v52 }
0x1319   : > { %4365 = vadd.xlane.f32.xlu0 %v4364_v54 }
0x13a6   : > { %v4366_v41 = vpop.xlane.xlu0 %4365 }
0x13a7   : > { %v4367_v59 = vmul.f32 0.03125, %v4366_v41 }
0x13a9   : > { %v4368_v25 = vsub.f32 %v4358_v52, %v4367_v59 }
0x13ab   : > { %v4369_v55 = vmul.f32 %v4368_v25, %v4368_v25 }
0x13ad   : > { %v4370_v56 = vsel %vm622_vm0, %v4369_v55, 0.0 }
0x13ae   : > { %4371 = vadd.xlane.f32.xlu1 %v4370_v56 }
0x143b   : > { %v4372_v57 = vpop.xlane.xlu1 %4371 }
0x143c   : > { %v4373_v27 = vmul.f32 0.03125, %v4372_v57 }
0x143e   : > { %v4374_v58 = vadd.f32 1e-12, %v4373_v27 }
0x1440   : > { %5675 = vrsqrt.f32 %v4374_v58 }
0x144a   : > { %v5676_v1 = vpop.eup %5675 }
0x144b   : > { %v4376_v2 = vmul.f32 %v5676_v1, %v4368_v25 }
0x144d   : > { %v4381_v5 = vmul.f32 %v4380_v61, %v4376_v2 }
0x144f   : > { %v4386_v6 = vadd.f32 %v4385_v4, %v4381_v5 }
0x1451   : > { %v4388_v7 = vrot.slane %v4386_v6, 1 }
0x1453   : > { %v4390_v62 = vadd.f32 %v4388_v7, %v4386_v6 }
0x1455   : > { %v4391_v0 = vmul.f32 0.5, %v4390_v62 }
0x1457   : > { %v4393_v63 = vsel %vm4392_vm3, %v4391_v0, 0.0 }
0x1458   : > { %4394 = vadd.xlane.f32.xlu0 %v4393_v63 }
0x14e5   : > { %v4395_v3 = vpop.xlane.xlu0 %4394 }
0x14e6   : > { %v4396_v9 = vmul.f32 0.03125, %v4395_v3 }
0x14e8   : > { %v4397_v10 = vsub.f32 %v4391_v0, %v4396_v9 }
0x14ea   : > { %v4398_v43 = vmul.f32 %v4397_v10, %v4397_v10 }
0x14ec   : > { %v4399_v8 = vsel %vm4392_vm3, %v4398_v43, 0.0 }
0x14ed   : > { %4400 = vadd.xlane.f32.xlu1 %v4399_v8 }
0x157a   : > { %v4401_v14 = vpop.xlane.xlu1 %4400 }
0x157b   : > { %v4402_v17 = vmul.f32 0.03125, %v4401_v14 }
0x157d   : > { %v4403_v18 = vadd.f32 1e-12, %v4402_v17 }
0x157f   : > { %5677 = vrsqrt.f32 %v4403_v18 }
0x1589   : > { %v5678_v21 = vpop.eup %5677 }
0x158a   : > { %v4405_v22 = vmul.f32 %v5678_v21, %v4397_v10 }
0x158c   : > { %v4409_v24 = vmul.f32 %v4407_v20, %v4405_v22 }
0x158e   : > { %v4412_v26 = vadd.f32 %v4410_v23, %v4409_v24 }
0x1590   : > { %5474 = vmatmul.mubr.msk.f32.vlgmr.msra.gmra.mrb[82].mxu0 %vm622_vm0, %v4412_v26 }
0x1591   : > { %5692 = shalt.err (!%p5689_p3)
}
0x1592   : > { %s5693_s27 = scalar_lea.hbm %s6737_s11, 16  ;;  %s5697_s30 = scalar_lea.hbm %s6819_s10, 32 }
0x1593   : > { %p5694_p4 = scmp.ne.s32.totalorder %s6737_s11, %s5693_s27  ;;  %p5698_p9 = scmp.lt.u32.totalorder %s6737_s11, %s6819_s10 }
0x1594   : > { %p5699_p10 = scmp.lt.u32.totalorder %s5697_s30, %s5693_s27  ;;  %p5701_p12 = scmp.lt.u32.totalorder %s5693_s27, %s6737_s11 }
0x1595   : > { %p5695_p7 = pnand %p5694_p4, %p5873_p5 }
0x1596   : > { %p5700_p11 = por %p5699_p10, %p5698_p9 }
0x1597   : > { %p5696_p8 = pneg %p5695_p7 }
0x1598   : > { %p5702_p13 = por %p5701_p12, %p5700_p11 }
0x159a   : > { %p5703_p0 = pnand %p5702_p13, %p5696_p8 }
0x159c   : > { %5706 = shalt.err (!%p5703_p0)
}
0x159d   : > { %5483 = dma.vmem_to_hbm [thread:$0]  (%p5873_p5), %s4519_s12, 16, %s6737_s11, %s4493_s15  }
0x159e   : > { %s355_s22 = scalar_lea.vmem [#allocation2], %s6696_s21  ;;  %s6766_s28 = scalar_lea.hbm %s6818_s9, %s4889_s26 }
0x159f   : > { %s4505_s20 = sshll.u32 %s355_s22, 4  ;;  %s4489_s30 = scalar_lea.sflag [#allocation3], %s6696_s21  ;;  %s6768_s20 = int_to_ptr.vmem [resolvable:$true] %s4505_s20 }
0x15a0   : > { %s5707_s11 = scalar_lea.vmem %s6768_s20, 16  ;;  %s5779_s12 = smov [#allocation2]  }
0x15a1   : > { %p5708_p1 = scmp.ne.s32.totalorder %s6768_s20, %s5707_s11  ;;  %s5711_s15 = sshll.u32 %s5779_s12, 4  ;;  %s5712_s15 = int_to_ptr.vmem [resolvable:$false] %s5711_s15 }
0x15a2   : > { %s5713_s17 = scalar_lea.vmem %s5712_s15, 32  ;;  %p5714_p4 = scmp.lt.s32.totalorder %s6768_s20, %s5712_s15 }
0x15a3   : > { %p5709_p2 = pnand %p5708_p1, %p5873_p5  ;;  %p5715_p7 = scmp.lt.s32.totalorder %s5713_s17, %s5707_s11 }
0x15a5   : > { %p5710_p3 = pneg %p5709_p2  ;;  %p5716_p8 = por %p5715_p7, %p5714_p4 }
0x15a7   : > { %p5717_p9 = pnand %p5716_p8, %p5710_p3 }
0x1663   : > { %v4482_v42 = vpop.f32.mrb[82].mxu0 }
0x1664   : > { %v4483_v28 = vadd.f32 %v4482_v42, %v6708_v60  ;;  %v5475_v29 = vpop.f32.mrb[83].mxu0 }
0x1666   : > { %4486 = vst [vmem:[%s355_s22] sm:$0x1] %v4483_v28 }
0x1667   : > { %5720 = shalt.err (!%p5717_p9)
}
0x1668   : > { %s5721_s21 = scalar_lea.hbm %s6766_s28, 16  ;;  %s5725_s18 = scalar_lea.hbm %s6818_s9, 32 }
0x1669   : > { %p5722_p10 = scmp.ne.s32.totalorder %s6766_s28, %s5721_s21  ;;  %p5726_p13 = scmp.lt.u32.totalorder %s6766_s28, %s6818_s9 }
0x166a   : > { %p5727_p0 = scmp.lt.u32.totalorder %s5725_s18, %s5721_s21  ;;  %p5729_p2 = scmp.lt.u32.totalorder %s5721_s21, %s6766_s28 }
0x166b   : > { %p5723_p11 = pnand %p5722_p10, %p5873_p5 }
0x166c   : > { %p5728_p1 = por %p5727_p0, %p5726_p13 }
0x166d   : > { %p5724_p12 = pneg %p5723_p11 }
0x166e   : > { %p5730_p3 = por %p5729_p2, %p5728_p1 }
0x1670   : > { %p5731_p4 = pnand %p5730_p3, %p5724_p12 }
0x1672   : > { %5734 = shalt.err (!%p5731_p4)
}
0x1673   : > { %5482 = dma.vmem_to_hbm [thread:$0]  (%p5873_p5), %s6768_s20, 16, %s6766_s28, %s4489_s30  }
0x1674 PF: > { %p5493_p7 = scmp.ge.s32.totalorder %s5773_s16, 2  ;;  %s4530_s27 = sand.u32 1, %s5761_s13  }
0x1675   : > { %s4531_s11 = scalar_lea.sflag [#allocation3], %s4530_s27 }
0x1676   : > { %p5487_p8 = pnand %p5493_p7, %p5877_p6 }
0x1678   : > { %5752 = dma.done.wait (!%p5487_p8), %s4531_s11, 16  }
0x1679   : > { %5754 = vsyncadd (!%p5487_p8), %s4531_s11, 4294967280  ;;  %s4539_s12 = scalar_lea.sflag [#allocation5], %s4530_s27 }
0x167a   : > { %5756 = dma.done.wait (!%p5487_p8), %s4539_s12, 16  }
0x167b   : > { %5758 = vsyncadd (!%p5487_p8), %s4539_s12, 4294967280  ;;  %s6825_s23 = sld [smem:[#allocation8_spill]]  ;;  %s6826_s15 = sld [smem:[#allocation9_spill]] }
0x167c   : > { %p24_p5 = scmp.ge.s32.totalorder %s5860_s19, 4   ;;  %s6827_s13 = smov %s5765_s14 }
0x167d   : > { %s6829_s16 = smov %s5860_s19 }
0x167e   :  { %26 = sbr.rel (!%p24_p5) target bundleno = 5 (0x5), region = 113 }
0x1681   : > { %s6828_s14 = smov %s6825_s23 }
0x1685   :  { %4543 = vsyncpa [#allocation3], 1 }
0x1686   :  { %4545 = vsyncpa [#allocation3 + $0x1], 1 }
0x1687   :  { %4546 = vsyncpa [#allocation5], 1 }
0x1688   :  { %4548 = vsyncpa [#allocation5 + $0x1], 1 }

</bundles_post_ra>
